<compile_context>
chip_gen: v5e
topology: v5e:2x2
jax: 0.10.0
libtpu: 0.0.40
codegen_flags: <defaults>
</compile_context>

<pallas_src>
import functools

import jax
import jax.numpy as jnp
from jax.experimental import pallas as pl
from jax.experimental.pallas import tpu as pltpu


# ----------------------------- in-kernel helpers ----------------------------

def _add_layer_norm(x, y, gamma, beta, eps):
    """LayerNorm(x + y) over the hidden axis, all statistics in f32."""
    z = x + y                                            # (L, D) f32
    mean = jnp.mean(z, axis=-1, keepdims=True)
    c = z - mean
    var = jnp.mean(c * c, axis=-1, keepdims=True)
    return c * jax.lax.rsqrt(var + eps) * gamma + beta   # (L, D) f32


def _mha_block(x_q, x_kv, mask, wqkv_ref, bqkv_ref, wo_ref, bo_ref,
               *, num_heads, head_dim):
    """Multi-head attention on VMEM-resident activations.

    x_q: (Lq, D) f32, x_kv: (Lk, D) f32, mask broadcastable to (H, Lq, Lk).
    wqkv_ref: (3, D, D) bf16; bqkv_ref: (3, 1, D) f32;
    wo_ref: (H, dh, D) bf16;  bo_ref: (1, D) f32.
    Returns (Lq, D) f32.
    """
    Lq = x_q.shape[0]
    Lk = x_kv.shape[0]
    H, dh = num_heads, head_dim

    xq_b = x_q.astype(jnp.bfloat16)
    xkv_b = x_kv.astype(jnp.bfloat16)

    # projections: bf16 MXU matmuls, f32 accumulation, f32 bias add
    q = jnp.dot(xq_b, wqkv_ref[0], preferred_element_type=jnp.float32) + bqkv_ref[0]
    k = jnp.dot(xkv_b, wqkv_ref[1], preferred_element_type=jnp.float32) + bqkv_ref[1]
    v = jnp.dot(xkv_b, wqkv_ref[2], preferred_element_type=jnp.float32) + bqkv_ref[2]
    q = q * (1.0 / (dh ** 0.5))          # softmax scale hoisted into q

    def to_heads(a, L):
        # (L, D) -T-> (D, L) -reshape(leading split)-> (H, dh, L) -swap-> (H, L, dh)
        # avoids lane-axis (minor-dim) splitting reshapes and head concat.
        return jnp.swapaxes(a.T.reshape(H, dh, L), 1, 2).astype(jnp.bfloat16)

    qh = to_heads(q, Lq)                 # (H, Lq, dh) bf16
    kh = to_heads(k, Lk)                 # (H, Lk, dh) bf16
    vh = to_heads(v, Lk)                 # (H, Lk, dh) bf16

    energy = jnp.einsum('hqd,hkd->hqk', qh, kh,
                        preferred_element_type=jnp.float32)       # (H, Lq, Lk) f32
    energy = jnp.where(mask == 0.0, -1e10, energy)
    energy = energy - jnp.max(energy, axis=-1, keepdims=True)
    p = jnp.exp(energy)
    attn = p * pl.reciprocal(jnp.sum(p, axis=-1, keepdims=True), approx=True)

    ctx = jnp.einsum('hqk,hkd->hqd', attn.astype(jnp.bfloat16), vh,
                     preferred_element_type=jnp.float32)          # (H, Lq, dh)

    # head merge folded into the output projection: out = sum_h ctx_h @ Wo_h
    per_head = jnp.einsum('hqd,hdn->hqn', ctx.astype(jnp.bfloat16), wo_ref[...],
                          preferred_element_type=jnp.float32)     # (H, Lq, D)
    return jnp.sum(per_head, axis=0) + bo_ref[...]                # (Lq, D) f32


# ------------------------------- fused kernel -------------------------------

def _decoder_layer_kernel(
        trg_ref, src_ref, tmask_ref, smask_ref,
        sa_wqkv_ref, sa_bqkv_ref, sa_wo_ref, sa_bo_ref,
        ca_wqkv_ref, ca_bqkv_ref, ca_wo_ref, ca_bo_ref,
        w1_ref, b1_ref, w2_ref, b2_ref,
        gamma_ref, beta_ref,
        out_ref, *, num_heads, head_dim, eps):
    """Entire decoder layer for one batch element, everything VMEM-resident."""
    trg = trg_ref[0]                         # (Lt, D) f32
    src = src_ref[0]                         # (Ls, D) f32
    tmask = tmask_ref[0]                     # (Lt, Lt) f32
    smask = smask_ref[0]                     # (1, Ls)  f32
    gamma = gamma_ref[...]                   # (1, D)
    beta = beta_ref[...]                     # (1, D)

    # ---- stage 1: masked self-attention + residual + (shared) LayerNorm ----
    sa = _mha_block(trg, trg, tmask[None],   # (1, Lt, Lt) -> broadcast over H
                    sa_wqkv_ref, sa_bqkv_ref, sa_wo_ref, sa_bo_ref,
                    num_heads=num_heads, head_dim=head_dim)
    x1 = _add_layer_norm(trg, sa, gamma, beta, eps)

    # ---- stage 2: encoder-decoder attention + residual + LayerNorm ---------
    ca = _mha_block(x1, src, smask[None],    # (1, 1, Ls) -> broadcast over H, Lq
                    ca_wqkv_ref, ca_bqkv_ref, ca_wo_ref, ca_bo_ref,
                    num_heads=num_heads, head_dim=head_dim)
    x2 = _add_layer_norm(x1, ca, gamma, beta, eps)

    # ---- stage 3: position-wise FFN + residual + LayerNorm -----------------
    h = jnp.dot(x2.astype(jnp.bfloat16), w1_ref[...],
                preferred_element_type=jnp.float32) + b1_ref[...]
    h = jnp.maximum(h, 0.0)
    ff = jnp.dot(h.astype(jnp.bfloat16), w2_ref[...],
                 preferred_element_type=jnp.float32) + b2_ref[...]
    out = _add_layer_norm(x2, ff, gamma, beta, eps)

    out_ref[0] = out.astype(out_ref.dtype)


# ------------------------------ Pallas wrapper -------------------------------

def _rep(shape):
    """Whole-array block, invariant across the batch grid axis (DMA'd once)."""
    return pl.BlockSpec(shape, lambda b: (0,) * len(shape))


def decoder_layer_forward(trg, src, trg_mask, src_mask, params,
                          *, num_heads, eps=1e-5):
    """Mirrors DecoderLayer.forward (dropout = identity / eval mode)."""
    B, Lt, D = trg.shape
    Ls = src.shape[1]
    dh = D // num_heads

    # compact masks (no O(B*Lt*Ls) broadcast ever hits HBM)
    tmask = trg_mask.reshape(B, Lt, Lt).astype(jnp.float32)
    smask = src_mask.reshape(B, 1, Ls).astype(jnp.float32)

    def pack_attn(p):
        wqkv = jnp.stack([p['wq'], p['wk'], p['wv']]).astype(jnp.bfloat16)   # (3,D,D)
        bqkv = jnp.stack([p['bq'], p['bk'], p['bv']]).astype(jnp.float32)    # (3,1,D)
        wo = p['wo'].reshape(num_heads, dh, D).astype(jnp.bfloat16)          # (H,dh,D)
        bo = p['bo'].astype(jnp.float32)                                     # (1,D)
        return wqkv, bqkv, wo, bo

    sa = pack_attn(params['self_attn'])
    ca = pack_attn(params['cross_attn'])
    w1 = params['pff']['w1'].astype(jnp.bfloat16)
    b1 = params['pff']['b1'].astype(jnp.float32)
    w2 = params['pff']['w2'].astype(jnp.bfloat16)
    b2 = params['pff']['b2'].astype(jnp.float32)
    gamma = params['ln']['gamma'].astype(jnp.float32)
    beta = params['ln']['beta'].astype(jnp.float32)

    bmap = lambda b: (b, 0, 0)
    kernel = functools.partial(_decoder_layer_kernel,
                               num_heads=num_heads, head_dim=dh, eps=eps)

    return pl.pallas_call(
        kernel,
        out_shape=jax.ShapeDtypeStruct((B, Lt, D), trg.dtype),
        grid=(B,),
        in_specs=[
            pl.BlockSpec((1, Lt, D), bmap),
            pl.BlockSpec((1, Ls, D), bmap),
            pl.BlockSpec((1, Lt, Lt), bmap),
            pl.BlockSpec((1, 1, Ls), bmap),
            _rep(sa[0].shape), _rep(sa[1].shape), _rep(sa[2].shape), _rep(sa[3].shape),
            _rep(ca[0].shape), _rep(ca[1].shape), _rep(ca[2].shape), _rep(ca[3].shape),
            _rep(w1.shape), _rep(b1.shape), _rep(w2.shape), _rep(b2.shape),
            _rep(gamma.shape), _rep(beta.shape),
        ],
        out_specs=pl.BlockSpec((1, Lt, D), bmap),
        compiler_params=pltpu.CompilerParams(
            dimension_semantics=("parallel",),          # v7x: shard batch over 2 TCs
            vmem_limit_bytes=32 * 1024 * 1024,          # explicit, safe on v5e/v6e/v7x
        ),
    )(trg.astype(jnp.float32), src.astype(jnp.float32), tmask, smask,
      *sa, *ca, w1, b1, w2, b2, gamma, beta)


# --------------------------- pure-JAX reference (f32) ------------------------

def _ref_mha(xq, xkv, mask, p, num_heads):
    B, Lq, D = xq.shape
    Lk = xkv.shape[1]
    dh = D // num_heads
    q = xq @ p['wq'] + p['bq']
    k = xkv @ p['wk'] + p['bk']
    v = xkv @ p['wv'] + p['bv']
    qh = q.reshape(B, Lq, num_heads, dh).transpose(0, 2, 1, 3)
    kh = k.reshape(B, Lk, num_heads, dh).transpose(0, 2, 1, 3)
    vh = v.reshape(B, Lk, num_heads, dh).transpose(0, 2, 1, 3)
    e = jnp.einsum('bhqd,bhkd->bhqk', qh, kh) / jnp.sqrt(jnp.float32(dh))
    e = jnp.where(mask == 0, -1e10, e)            # mask (B,1,Lq,Lk) or (B,1,1,Lk)
    a = jax.nn.softmax(e, axis=-1)
    ctx = jnp.einsum('bhqk,bhkd->bhqd', a, vh).transpose(0, 2, 1, 3).reshape(B, Lq, D)
    return ctx @ p['wo'] + p['bo']


def _ref_ln(x, y, p, eps=1e-5):
    z = x + y
    mean = jnp.mean(z, axis=-1, keepdims=True)
    var = jnp.mean((z - mean) ** 2, axis=-1, keepdims=True)
    return (z - mean) / jnp.sqrt(var + eps) * p['gamma'] + p['beta']


def _ref_forward(trg, src, trg_mask, src_mask, params, num_heads):
    x1 = _ref_ln(trg, _ref_mha(trg, trg, trg_mask, params['self_attn'], num_heads),
                 params['ln'])
    x2 = _ref_ln(x1, _ref_mha(x1, src, src_mask, params['cross_attn'], num_heads),
                 params['ln'])
    ff = jnp.maximum(x2 @ params['pff']['w1'] + params['pff']['b1'], 0.0) \
         @ params['pff']['w2'] + params['pff']['b2']
    return _ref_ln(x2, ff, params['ln'])


# ---------------------------------- main -------------------------------------

def _init_params(key, hidden_dim, pff_hidden_dim):
    ks = jax.random.split(key, 12)
    s = 0.05

    def attn(k0, k1, k2, k3):
        return dict(
            wq=s * jax.random.normal(k0, (hidden_dim, hidden_dim), jnp.float32),
            bq=s * jax.random.normal(k0, (1, hidden_dim), jnp.float32),
            wk=s * jax.random.normal(k1, (hidden_dim, hidden_dim), jnp.float32),
            bk=s * jax.random.normal(k1, (1, hidden_dim), jnp.float32),
            wv=s * jax.random.normal(k2, (hidden_dim, hidden_dim), jnp.float32),
            bv=s * jax.random.normal(k2, (1, hidden_dim), jnp.float32),
            wo=s * jax.random.normal(k3, (hidden_dim, hidden_dim), jnp.float32),
            bo=s * jax.random.normal(k3, (1, hidden_dim), jnp.float32),
        )

    return dict(
        self_attn=attn(*ks[0:4]),
        cross_attn=attn(*ks[4:8]),
        pff=dict(
            w1=s * jax.random.normal(ks[8], (hidden_dim, pff_hidden_dim), jnp.float32),
            b1=s * jax.random.normal(ks[8], (1, pff_hidden_dim), jnp.float32),
            w2=s * jax.random.normal(ks[9], (pff_hidden_dim, hidden_dim), jnp.float32),
            b2=s * jax.random.normal(ks[9], (1, hidden_dim), jnp.float32),
        ),
        # single shared LayerNorm, matching `self.layerNormalization` in the spec
        ln=dict(
            gamma=jnp.ones((1, hidden_dim), jnp.float32),
            beta=jnp.zeros((1, hidden_dim), jnp.float32),
        ),
    )


if __name__ == "__main__":
    B, Lt, Ls = 2, 8, 8
    HIDDEN, HEADS, PFF = 32, 4, 64

    key = jax.random.PRNGKey(0)
    kt, ksrc, kp = jax.random.split(key, 3)

    trg = jax.random.normal(kt, (B, Lt, HIDDEN), jnp.float32)
    src = jax.random.normal(ksrc, (B, Ls, HIDDEN), jnp.float32)

    # causal target mask (B, 1, Lt, Lt); source padding mask (B, 1, 1, Ls)
    trg_mask = jnp.broadcast_to(
        jnp.tril(jnp.ones((Lt, Lt), jnp.float32))[None, None], (B, 1, Lt, Lt))
    src_pad = jnp.ones((B, Ls), jnp.float32).at[1, Ls - 2:].set(0.0)
    src_mask = src_pad[:, None, None, :]

    params = _init_params(kp, HIDDEN, PFF)

    out = decoder_layer_forward(trg, src, trg_mask, src_mask, params,
                                num_heads=HEADS)
    out = jax.block_until_ready(out)

    ref = _ref_forward(trg, src, trg_mask, src_mask, params, HEADS)
    assert out.shape == (B, Lt, HIDDEN)
    # bf16 matmuls + approx-reciprocal softmax vs. f32 reference
    assert jnp.allclose(out, ref, rtol=2e-2, atol=2e-2), \
        f"max abs err = {jnp.max(jnp.abs(out - ref))}"

    print("KERNEL_OK")
</pallas_src>

<mosaic_0001>
module attributes {stable_mosaic.version = 11 : i64} {
  func.func @_decoder_layer_kernel(%arg0: i32, %arg1: memref<1x8x32xf32, #tpu.memory_space<vmem>>, %arg2: memref<1x8x32xf32, #tpu.memory_space<vmem>>, %arg3: memref<1x8x8xf32, #tpu.memory_space<vmem>>, %arg4: memref<1x1x8xf32, #tpu.memory_space<vmem>>, %arg5: memref<3x32x32xbf16, #tpu.memory_space<vmem>>, %arg6: memref<3x1x32xf32, #tpu.memory_space<vmem>>, %arg7: memref<4x8x32xbf16, #tpu.memory_space<vmem>>, %arg8: memref<1x32xf32, #tpu.memory_space<vmem>>, %arg9: memref<3x32x32xbf16, #tpu.memory_space<vmem>>, %arg10: memref<3x1x32xf32, #tpu.memory_space<vmem>>, %arg11: memref<4x8x32xbf16, #tpu.memory_space<vmem>>, %arg12: memref<1x32xf32, #tpu.memory_space<vmem>>, %arg13: memref<32x64xbf16, #tpu.memory_space<vmem>>, %arg14: memref<1x64xf32, #tpu.memory_space<vmem>>, %arg15: memref<64x32xbf16, #tpu.memory_space<vmem>>, %arg16: memref<1x32xf32, #tpu.memory_space<vmem>>, %arg17: memref<1x32xf32, #tpu.memory_space<vmem>>, %arg18: memref<1x32xf32, #tpu.memory_space<vmem>>, %arg19: memref<1x8x32xf32, #tpu.memory_space<vmem>>) attributes {dimension_semantics = [#tpu.dimension_semantics<parallel>], iteration_bounds = array<i64: 2>, scalar_prefetch = 0 : i64, scratch_operands = 0 : i64, tpu.core_type = #tpu.core_type<tc>, window_params = [{transform_indices = @transform_0, window_bounds = array<i64: 1, 8, 32>}, {transform_indices = @transform_1, window_bounds = array<i64: 1, 8, 32>}, {transform_indices = @transform_2, window_bounds = array<i64: 1, 8, 8>}, {transform_indices = @transform_3, window_bounds = array<i64: 1, 1, 8>}, {pipeline_mode = #tpu.pipeline_mode<synchronous>, transform_indices = @transform_4, window_bounds = array<i64: 3, 32, 32>}, {pipeline_mode = #tpu.pipeline_mode<synchronous>, transform_indices = @transform_5, window_bounds = array<i64: 3, 1, 32>}, {pipeline_mode = #tpu.pipeline_mode<synchronous>, transform_indices = @transform_6, window_bounds = array<i64: 4, 8, 32>}, {pipeline_mode = #tpu.pipeline_mode<synchronous>, transform_indices = @transform_7, window_bounds = array<i64: 1, 32>}, {pipeline_mode = #tpu.pipeline_mode<synchronous>, transform_indices = @transform_8, window_bounds = array<i64: 3, 32, 32>}, {pipeline_mode = #tpu.pipeline_mode<synchronous>, transform_indices = @transform_9, window_bounds = array<i64: 3, 1, 32>}, {pipeline_mode = #tpu.pipeline_mode<synchronous>, transform_indices = @transform_10, window_bounds = array<i64: 4, 8, 32>}, {pipeline_mode = #tpu.pipeline_mode<synchronous>, transform_indices = @transform_11, window_bounds = array<i64: 1, 32>}, {pipeline_mode = #tpu.pipeline_mode<synchronous>, transform_indices = @transform_12, window_bounds = array<i64: 32, 64>}, {pipeline_mode = #tpu.pipeline_mode<synchronous>, transform_indices = @transform_13, window_bounds = array<i64: 1, 64>}, {pipeline_mode = #tpu.pipeline_mode<synchronous>, transform_indices = @transform_14, window_bounds = array<i64: 64, 32>}, {pipeline_mode = #tpu.pipeline_mode<synchronous>, transform_indices = @transform_15, window_bounds = array<i64: 1, 32>}, {pipeline_mode = #tpu.pipeline_mode<synchronous>, transform_indices = @transform_16, window_bounds = array<i64: 1, 32>}, {pipeline_mode = #tpu.pipeline_mode<synchronous>, transform_indices = @transform_17, window_bounds = array<i64: 1, 32>}, {transform_indices = @transform_18, window_bounds = array<i64: 1, 8, 32>}]} {
    %c0 = arith.constant 0 : index
    %c0_0 = arith.constant 0 : index
    %c0_1 = arith.constant 0 : index
    %0 = vector.load %arg1[%c0, %c0_0, %c0_1] : memref<1x8x32xf32, #tpu.memory_space<vmem>>, vector<1x8x32xf32>
    %1 = vector.shape_cast %0 : vector<1x8x32xf32> to vector<8x32xf32>
    %c0_2 = arith.constant 0 : index
    %c0_3 = arith.constant 0 : index
    %c0_4 = arith.constant 0 : index
    %2 = vector.load %arg2[%c0_2, %c0_3, %c0_4] : memref<1x8x32xf32, #tpu.memory_space<vmem>>, vector<1x8x32xf32>
    %3 = vector.shape_cast %2 : vector<1x8x32xf32> to vector<8x32xf32>
    %c0_5 = arith.constant 0 : index
    %c0_6 = arith.constant 0 : index
    %c0_7 = arith.constant 0 : index
    %4 = vector.load %arg3[%c0_5, %c0_6, %c0_7] : memref<1x8x8xf32, #tpu.memory_space<vmem>>, vector<1x8x8xf32>
    %5 = vector.shape_cast %4 : vector<1x8x8xf32> to vector<8x8xf32>
    %c0_8 = arith.constant 0 : index
    %c0_9 = arith.constant 0 : index
    %c0_10 = arith.constant 0 : index
    %6 = vector.load %arg4[%c0_8, %c0_9, %c0_10] : memref<1x1x8xf32, #tpu.memory_space<vmem>>, vector<1x1x8xf32>
    %7 = vector.shape_cast %6 : vector<1x1x8xf32> to vector<1x8xf32>
    %c0_11 = arith.constant 0 : index
    %c0_12 = arith.constant 0 : index
    %8 = vector.load %arg17[%c0_11, %c0_12] : memref<1x32xf32, #tpu.memory_space<vmem>>, vector<1x32xf32>
    %c0_13 = arith.constant 0 : index
    %c0_14 = arith.constant 0 : index
    %9 = vector.load %arg18[%c0_13, %c0_14] : memref<1x32xf32, #tpu.memory_space<vmem>>, vector<1x32xf32>
    %10 = vector.shape_cast %5 : vector<8x8xf32> to vector<1x8x8xf32>
    %11 = arith.truncf %1 : vector<8x32xf32> to vector<8x32xbf16>
    %12 = arith.truncf %1 : vector<8x32xf32> to vector<8x32xbf16>
    %c0_15 = arith.constant 0 : index
    %c0_16 = arith.constant 0 : index
    %c0_17 = arith.constant 0 : index
    %13 = vector.load %arg5[%c0_15, %c0_16, %c0_17] : memref<3x32x32xbf16, #tpu.memory_space<vmem>>, vector<1x32x32xbf16>
    %14 = vector.shape_cast %13 : vector<1x32x32xbf16> to vector<32x32xbf16>
    %cst = arith.constant dense<0.000000e+00> : vector<8x32xf32>
    %15 = tpu.matmul %11, %14, %cst {dimension_numbers = #tpu.dot_dimension_numbers<[1], [0], [0], [1], [0, 0, 1, 1], [], []>} : vector<8x32xbf16>, vector<32x32xbf16>, vector<8x32xf32> -> vector<8x32xf32>
    %c0_18 = arith.constant 0 : index
    %c0_19 = arith.constant 0 : index
    %c0_20 = arith.constant 0 : index
    %16 = vector.load %arg6[%c0_18, %c0_19, %c0_20] : memref<3x1x32xf32, #tpu.memory_space<vmem>>, vector<1x1x32xf32>
    %17 = vector.shape_cast %16 : vector<1x1x32xf32> to vector<1x32xf32>
    %18 = vector.broadcast %17 : vector<1x32xf32> to vector<8x32xf32>
    %19 = arith.addf %15, %18 : vector<8x32xf32>
    %c1 = arith.constant 1 : index
    %c0_21 = arith.constant 0 : index
    %c0_22 = arith.constant 0 : index
    %20 = vector.load %arg5[%c1, %c0_21, %c0_22] : memref<3x32x32xbf16, #tpu.memory_space<vmem>>, vector<1x32x32xbf16>
    %21 = vector.shape_cast %20 : vector<1x32x32xbf16> to vector<32x32xbf16>
    %cst_23 = arith.constant dense<0.000000e+00> : vector<8x32xf32>
    %22 = tpu.matmul %12, %21, %cst_23 {dimension_numbers = #tpu.dot_dimension_numbers<[1], [0], [0], [1], [0, 0, 1, 1], [], []>} : vector<8x32xbf16>, vector<32x32xbf16>, vector<8x32xf32> -> vector<8x32xf32>
    %c1_24 = arith.constant 1 : index
    %c0_25 = arith.constant 0 : index
    %c0_26 = arith.constant 0 : index
    %23 = vector.load %arg6[%c1_24, %c0_25, %c0_26] : memref<3x1x32xf32, #tpu.memory_space<vmem>>, vector<1x1x32xf32>
    %24 = vector.shape_cast %23 : vector<1x1x32xf32> to vector<1x32xf32>
    %25 = vector.broadcast %24 : vector<1x32xf32> to vector<8x32xf32>
    %26 = arith.addf %22, %25 : vector<8x32xf32>
    %c2 = arith.constant 2 : index
    %c0_27 = arith.constant 0 : index
    %c0_28 = arith.constant 0 : index
    %27 = vector.load %arg5[%c2, %c0_27, %c0_28] : memref<3x32x32xbf16, #tpu.memory_space<vmem>>, vector<1x32x32xbf16>
    %28 = vector.shape_cast %27 : vector<1x32x32xbf16> to vector<32x32xbf16>
    %cst_29 = arith.constant dense<0.000000e+00> : vector<8x32xf32>
    %29 = tpu.matmul %12, %28, %cst_29 {dimension_numbers = #tpu.dot_dimension_numbers<[1], [0], [0], [1], [0, 0, 1, 1], [], []>} : vector<8x32xbf16>, vector<32x32xbf16>, vector<8x32xf32> -> vector<8x32xf32>
    %c2_30 = arith.constant 2 : index
    %c0_31 = arith.constant 0 : index
    %c0_32 = arith.constant 0 : index
    %30 = vector.load %arg6[%c2_30, %c0_31, %c0_32] : memref<3x1x32xf32, #tpu.memory_space<vmem>>, vector<1x1x32xf32>
    %31 = vector.shape_cast %30 : vector<1x1x32xf32> to vector<1x32xf32>
    %32 = vector.broadcast %31 : vector<1x32xf32> to vector<8x32xf32>
    %33 = arith.addf %29, %32 : vector<8x32xf32>
    %cst_33 = arith.constant 0.353553385 : f32
    %34 = vector.broadcast %cst_33 : f32 to vector<8x32xf32>
    %35 = arith.mulf %19, %34 : vector<8x32xf32>
    %36 = tpu.transpose %35, [1, 0] : vector<8x32xf32> -> vector<32x8xf32>
    %37 = vector.shape_cast %36 : vector<32x8xf32> to vector<4x8x8xf32>
    %38 = tpu.transpose %37, [0, 2, 1] : vector<4x8x8xf32> -> vector<4x8x8xf32>
    %39 = arith.truncf %38 : vector<4x8x8xf32> to vector<4x8x8xbf16>
    %40 = tpu.transpose %26, [1, 0] : vector<8x32xf32> -> vector<32x8xf32>
    %41 = vector.shape_cast %40 : vector<32x8xf32> to vector<4x8x8xf32>
    %42 = tpu.transpose %41, [0, 2, 1] : vector<4x8x8xf32> -> vector<4x8x8xf32>
    %43 = arith.truncf %42 : vector<4x8x8xf32> to vector<4x8x8xbf16>
    %44 = tpu.transpose %33, [1, 0] : vector<8x32xf32> -> vector<32x8xf32>
    %45 = vector.shape_cast %44 : vector<32x8xf32> to vector<4x8x8xf32>
    %46 = tpu.transpose %45, [0, 2, 1] : vector<4x8x8xf32> -> vector<4x8x8xf32>
    %47 = arith.truncf %46 : vector<4x8x8xf32> to vector<4x8x8xbf16>
    "tpu.trace_start"() <{level = 10 : i32, message = "hqd,hkd->hqk"}> : () -> ()
    %cst_34 = arith.constant dense<0.000000e+00> : vector<4x8x8xf32>
    %48 = tpu.matmul %39, %43, %cst_34 {dimension_numbers = #tpu.dot_dimension_numbers<[2], [2], [1], [1], [0, 0, 0, 1, 1, 1], [0], [0]>} : vector<4x8x8xbf16>, vector<4x8x8xbf16>, vector<4x8x8xf32> -> vector<4x8x8xf32>
    %cst_35 = arith.constant 0.000000e+00 : f32
    "tpu.trace_stop"() : () -> ()
    %49 = vector.broadcast %cst_35 : f32 to vector<1x8x8xf32>
    %50 = arith.cmpf oeq, %10, %49 : vector<1x8x8xf32>
    %cst_36 = arith.constant -1.000000e+10 : f32
    %51 = vector.shape_cast %50 : vector<1x8x8xi1> to vector<1x8x8xi1>
    %52 = vector.broadcast %51 : vector<1x8x8xi1> to vector<4x8x8xi1>
    %53 = vector.broadcast %cst_36 : f32 to vector<4x8x8xf32>
    %54 = arith.select %52, %53, %48 : vector<4x8x8xi1>, vector<4x8x8xf32>
    %cst_37 = arith.constant dense<0xFF800000> : vector<4x8xf32>
    %55 = vector.multi_reduction <maximumf>, %54, %cst_37 [2] : vector<4x8x8xf32> to vector<4x8xf32>
    %56 = vector.shape_cast %55 : vector<4x8xf32> to vector<4x8x1xf32>
    %57 = vector.broadcast %56 : vector<4x8x1xf32> to vector<4x8x8xf32>
    %58 = arith.subf %54, %57 : vector<4x8x8xf32>
    %59 = math.exp %58 : vector<4x8x8xf32>
    %cst_38 = arith.constant dense<0.000000e+00> : vector<4x8xf32>
    %60 = vector.multi_reduction <add>, %59, %cst_38 [2] : vector<4x8x8xf32> to vector<4x8xf32>
    %61 = vector.shape_cast %60 : vector<4x8xf32> to vector<4x8x1xf32>
    %62 = tpu.reciprocal %61 {approx = true} : vector<4x8x1xf32> -> vector<4x8x1xf32>
    %63 = vector.broadcast %62 : vector<4x8x1xf32> to vector<4x8x8xf32>
    %64 = arith.mulf %59, %63 : vector<4x8x8xf32>
    %65 = arith.truncf %64 : vector<4x8x8xf32> to vector<4x8x8xbf16>
    "tpu.trace_start"() <{level = 10 : i32, message = "hqk,hkd->hqd"}> : () -> ()
    %cst_39 = arith.constant dense<0.000000e+00> : vector<4x8x8xf32>
    %66 = tpu.matmul %65, %47, %cst_39 {dimension_numbers = #tpu.dot_dimension_numbers<[2], [1], [1], [2], [0, 0, 0, 1, 1, 2], [0], [0]>} : vector<4x8x8xbf16>, vector<4x8x8xbf16>, vector<4x8x8xf32> -> vector<4x8x8xf32>
    "tpu.trace_stop"() : () -> ()
    %67 = arith.truncf %66 : vector<4x8x8xf32> to vector<4x8x8xbf16>
    %c0_40 = arith.constant 0 : index
    %c0_41 = arith.constant 0 : index
    %c0_42 = arith.constant 0 : index
    %68 = vector.load %arg7[%c0_40, %c0_41, %c0_42] : memref<4x8x32xbf16, #tpu.memory_space<vmem>>, vector<4x8x32xbf16>
    "tpu.trace_start"() <{level = 10 : i32, message = "hqd,hdn->hqn"}> : () -> ()
    %cst_43 = arith.constant dense<0.000000e+00> : vector<4x8x32xf32>
    %69 = tpu.matmul %67, %68, %cst_43 {dimension_numbers = #tpu.dot_dimension_numbers<[2], [1], [1], [2], [0, 0, 0, 1, 1, 2], [0], [0]>} : vector<4x8x8xbf16>, vector<4x8x32xbf16>, vector<4x8x32xf32> -> vector<4x8x32xf32>
    "tpu.trace_stop"() : () -> ()
    %cst_44 = arith.constant dense<0.000000e+00> : vector<8x32xf32>
    %70 = vector.multi_reduction <add>, %69, %cst_44 [0] : vector<4x8x32xf32> to vector<8x32xf32>
    %c0_45 = arith.constant 0 : index
    %c0_46 = arith.constant 0 : index
    %71 = vector.load %arg8[%c0_45, %c0_46] : memref<1x32xf32, #tpu.memory_space<vmem>>, vector<1x32xf32>
    %72 = vector.broadcast %71 : vector<1x32xf32> to vector<8x32xf32>
    %73 = arith.addf %70, %72 : vector<8x32xf32>
    %74 = arith.addf %1, %73 : vector<8x32xf32>
    %cst_47 = arith.constant dense<0.000000e+00> : vector<8xf32>
    %75 = vector.multi_reduction <add>, %74, %cst_47 [1] : vector<8x32xf32> to vector<8xf32>
    %76 = vector.shape_cast %75 : vector<8xf32> to vector<8x1xf32>
    %cst_48 = arith.constant 3.200000e+01 : f32
    %77 = vector.broadcast %cst_48 : f32 to vector<8x1xf32>
    %78 = arith.divf %76, %77 : vector<8x1xf32>
    %79 = vector.broadcast %78 : vector<8x1xf32> to vector<8x32xf32>
    %80 = arith.subf %74, %79 : vector<8x32xf32>
    %81 = arith.mulf %80, %80 : vector<8x32xf32>
    %cst_49 = arith.constant dense<0.000000e+00> : vector<8xf32>
    %82 = vector.multi_reduction <add>, %81, %cst_49 [1] : vector<8x32xf32> to vector<8xf32>
    %83 = vector.shape_cast %82 : vector<8xf32> to vector<8x1xf32>
    %cst_50 = arith.constant 3.200000e+01 : f32
    %84 = vector.broadcast %cst_50 : f32 to vector<8x1xf32>
    %85 = arith.divf %83, %84 : vector<8x1xf32>
    %cst_51 = arith.constant 9.99999974E-6 : f32
    %86 = vector.broadcast %cst_51 : f32 to vector<8x1xf32>
    %87 = arith.addf %85, %86 : vector<8x1xf32>
    %88 = math.rsqrt %87 : vector<8x1xf32>
    %89 = vector.broadcast %88 : vector<8x1xf32> to vector<8x32xf32>
    %90 = arith.mulf %80, %89 : vector<8x32xf32>
    %91 = vector.broadcast %8 : vector<1x32xf32> to vector<8x32xf32>
    %92 = arith.mulf %90, %91 : vector<8x32xf32>
    %93 = vector.broadcast %9 : vector<1x32xf32> to vector<8x32xf32>
    %94 = arith.addf %92, %93 : vector<8x32xf32>
    %95 = vector.shape_cast %7 : vector<1x8xf32> to vector<1x1x8xf32>
    %96 = arith.truncf %94 : vector<8x32xf32> to vector<8x32xbf16>
    %97 = arith.truncf %3 : vector<8x32xf32> to vector<8x32xbf16>
    %c0_52 = arith.constant 0 : index
    %c0_53 = arith.constant 0 : index
    %c0_54 = arith.constant 0 : index
    %98 = vector.load %arg9[%c0_52, %c0_53, %c0_54] : memref<3x32x32xbf16, #tpu.memory_space<vmem>>, vector<1x32x32xbf16>
    %99 = vector.shape_cast %98 : vector<1x32x32xbf16> to vector<32x32xbf16>
    %cst_55 = arith.constant dense<0.000000e+00> : vector<8x32xf32>
    %100 = tpu.matmul %96, %99, %cst_55 {dimension_numbers = #tpu.dot_dimension_numbers<[1], [0], [0], [1], [0, 0, 1, 1], [], []>} : vector<8x32xbf16>, vector<32x32xbf16>, vector<8x32xf32> -> vector<8x32xf32>
    %c0_56 = arith.constant 0 : index
    %c0_57 = arith.constant 0 : index
    %c0_58 = arith.constant 0 : index
    %101 = vector.load %arg10[%c0_56, %c0_57, %c0_58] : memref<3x1x32xf32, #tpu.memory_space<vmem>>, vector<1x1x32xf32>
    %102 = vector.shape_cast %101 : vector<1x1x32xf32> to vector<1x32xf32>
    %103 = vector.broadcast %102 : vector<1x32xf32> to vector<8x32xf32>
    %104 = arith.addf %100, %103 : vector<8x32xf32>
    %c1_59 = arith.constant 1 : index
    %c0_60 = arith.constant 0 : index
    %c0_61 = arith.constant 0 : index
    %105 = vector.load %arg9[%c1_59, %c0_60, %c0_61] : memref<3x32x32xbf16, #tpu.memory_space<vmem>>, vector<1x32x32xbf16>
    %106 = vector.shape_cast %105 : vector<1x32x32xbf16> to vector<32x32xbf16>
    %cst_62 = arith.constant dense<0.000000e+00> : vector<8x32xf32>
    %107 = tpu.matmul %97, %106, %cst_62 {dimension_numbers = #tpu.dot_dimension_numbers<[1], [0], [0], [1], [0, 0, 1, 1], [], []>} : vector<8x32xbf16>, vector<32x32xbf16>, vector<8x32xf32> -> vector<8x32xf32>
    %c1_63 = arith.constant 1 : index
    %c0_64 = arith.constant 0 : index
    %c0_65 = arith.constant 0 : index
    %108 = vector.load %arg10[%c1_63, %c0_64, %c0_65] : memref<3x1x32xf32, #tpu.memory_space<vmem>>, vector<1x1x32xf32>
    %109 = vector.shape_cast %108 : vector<1x1x32xf32> to vector<1x32xf32>
    %110 = vector.broadcast %109 : vector<1x32xf32> to vector<8x32xf32>
    %111 = arith.addf %107, %110 : vector<8x32xf32>
    %c2_66 = arith.constant 2 : index
    %c0_67 = arith.constant 0 : index
    %c0_68 = arith.constant 0 : index
    %112 = vector.load %arg9[%c2_66, %c0_67, %c0_68] : memref<3x32x32xbf16, #tpu.memory_space<vmem>>, vector<1x32x32xbf16>
    %113 = vector.shape_cast %112 : vector<1x32x32xbf16> to vector<32x32xbf16>
    %cst_69 = arith.constant dense<0.000000e+00> : vector<8x32xf32>
    %114 = tpu.matmul %97, %113, %cst_69 {dimension_numbers = #tpu.dot_dimension_numbers<[1], [0], [0], [1], [0, 0, 1, 1], [], []>} : vector<8x32xbf16>, vector<32x32xbf16>, vector<8x32xf32> -> vector<8x32xf32>
    %c2_70 = arith.constant 2 : index
    %c0_71 = arith.constant 0 : index
    %c0_72 = arith.constant 0 : index
    %115 = vector.load %arg10[%c2_70, %c0_71, %c0_72] : memref<3x1x32xf32, #tpu.memory_space<vmem>>, vector<1x1x32xf32>
    %116 = vector.shape_cast %115 : vector<1x1x32xf32> to vector<1x32xf32>
    %117 = vector.broadcast %116 : vector<1x32xf32> to vector<8x32xf32>
    %118 = arith.addf %114, %117 : vector<8x32xf32>
    %cst_73 = arith.constant 0.353553385 : f32
    %119 = vector.broadcast %cst_73 : f32 to vector<8x32xf32>
    %120 = arith.mulf %104, %119 : vector<8x32xf32>
    %121 = tpu.transpose %120, [1, 0] : vector<8x32xf32> -> vector<32x8xf32>
    %122 = vector.shape_cast %121 : vector<32x8xf32> to vector<4x8x8xf32>
    %123 = tpu.transpose %122, [0, 2, 1] : vector<4x8x8xf32> -> vector<4x8x8xf32>
    %124 = arith.truncf %123 : vector<4x8x8xf32> to vector<4x8x8xbf16>
    %125 = tpu.transpose %111, [1, 0] : vector<8x32xf32> -> vector<32x8xf32>
    %126 = vector.shape_cast %125 : vector<32x8xf32> to vector<4x8x8xf32>
    %127 = tpu.transpose %126, [0, 2, 1] : vector<4x8x8xf32> -> vector<4x8x8xf32>
    %128 = arith.truncf %127 : vector<4x8x8xf32> to vector<4x8x8xbf16>
    %129 = tpu.transpose %118, [1, 0] : vector<8x32xf32> -> vector<32x8xf32>
    %130 = vector.shape_cast %129 : vector<32x8xf32> to vector<4x8x8xf32>
    %131 = tpu.transpose %130, [0, 2, 1] : vector<4x8x8xf32> -> vector<4x8x8xf32>
    %132 = arith.truncf %131 : vector<4x8x8xf32> to vector<4x8x8xbf16>
    "tpu.trace_start"() <{level = 10 : i32, message = "hqd,hkd->hqk"}> : () -> ()
    %cst_74 = arith.constant dense<0.000000e+00> : vector<4x8x8xf32>
    %133 = tpu.matmul %124, %128, %cst_74 {dimension_numbers = #tpu.dot_dimension_numbers<[2], [2], [1], [1], [0, 0, 0, 1, 1, 1], [0], [0]>} : vector<4x8x8xbf16>, vector<4x8x8xbf16>, vector<4x8x8xf32> -> vector<4x8x8xf32>
    %cst_75 = arith.constant 0.000000e+00 : f32
    "tpu.trace_stop"() : () -> ()
    %134 = vector.broadcast %cst_75 : f32 to vector<1x1x8xf32>
    %135 = arith.cmpf oeq, %95, %134 : vector<1x1x8xf32>
    %cst_76 = arith.constant -1.000000e+10 : f32
    %136 = vector.shape_cast %135 : vector<1x1x8xi1> to vector<1x1x8xi1>
    %137 = vector.broadcast %136 : vector<1x1x8xi1> to vector<4x8x8xi1>
    %138 = vector.broadcast %cst_76 : f32 to vector<4x8x8xf32>
    %139 = arith.select %137, %138, %133 : vector<4x8x8xi1>, vector<4x8x8xf32>
    %cst_77 = arith.constant dense<0xFF800000> : vector<4x8xf32>
    %140 = vector.multi_reduction <maximumf>, %139, %cst_77 [2] : vector<4x8x8xf32> to vector<4x8xf32>
    %141 = vector.shape_cast %140 : vector<4x8xf32> to vector<4x8x1xf32>
    %142 = vector.broadcast %141 : vector<4x8x1xf32> to vector<4x8x8xf32>
    %143 = arith.subf %139, %142 : vector<4x8x8xf32>
    %144 = math.exp %143 : vector<4x8x8xf32>
    %cst_78 = arith.constant dense<0.000000e+00> : vector<4x8xf32>
    %145 = vector.multi_reduction <add>, %144, %cst_78 [2] : vector<4x8x8xf32> to vector<4x8xf32>
    %146 = vector.shape_cast %145 : vector<4x8xf32> to vector<4x8x1xf32>
    %147 = tpu.reciprocal %146 {approx = true} : vector<4x8x1xf32> -> vector<4x8x1xf32>
    %148 = vector.broadcast %147 : vector<4x8x1xf32> to vector<4x8x8xf32>
    %149 = arith.mulf %144, %148 : vector<4x8x8xf32>
    %150 = arith.truncf %149 : vector<4x8x8xf32> to vector<4x8x8xbf16>
    "tpu.trace_start"() <{level = 10 : i32, message = "hqk,hkd->hqd"}> : () -> ()
    %cst_79 = arith.constant dense<0.000000e+00> : vector<4x8x8xf32>
    %151 = tpu.matmul %150, %132, %cst_79 {dimension_numbers = #tpu.dot_dimension_numbers<[2], [1], [1], [2], [0, 0, 0, 1, 1, 2], [0], [0]>} : vector<4x8x8xbf16>, vector<4x8x8xbf16>, vector<4x8x8xf32> -> vector<4x8x8xf32>
    "tpu.trace_stop"() : () -> ()
    %152 = arith.truncf %151 : vector<4x8x8xf32> to vector<4x8x8xbf16>
    %c0_80 = arith.constant 0 : index
    %c0_81 = arith.constant 0 : index
    %c0_82 = arith.constant 0 : index
    %153 = vector.load %arg11[%c0_80, %c0_81, %c0_82] : memref<4x8x32xbf16, #tpu.memory_space<vmem>>, vector<4x8x32xbf16>
    "tpu.trace_start"() <{level = 10 : i32, message = "hqd,hdn->hqn"}> : () -> ()
    %cst_83 = arith.constant dense<0.000000e+00> : vector<4x8x32xf32>
    %154 = tpu.matmul %152, %153, %cst_83 {dimension_numbers = #tpu.dot_dimension_numbers<[2], [1], [1], [2], [0, 0, 0, 1, 1, 2], [0], [0]>} : vector<4x8x8xbf16>, vector<4x8x32xbf16>, vector<4x8x32xf32> -> vector<4x8x32xf32>
    "tpu.trace_stop"() : () -> ()
    %cst_84 = arith.constant dense<0.000000e+00> : vector<8x32xf32>
    %155 = vector.multi_reduction <add>, %154, %cst_84 [0] : vector<4x8x32xf32> to vector<8x32xf32>
    %c0_85 = arith.constant 0 : index
    %c0_86 = arith.constant 0 : index
    %156 = vector.load %arg12[%c0_85, %c0_86] : memref<1x32xf32, #tpu.memory_space<vmem>>, vector<1x32xf32>
    %157 = vector.broadcast %156 : vector<1x32xf32> to vector<8x32xf32>
    %158 = arith.addf %155, %157 : vector<8x32xf32>
    %159 = arith.addf %94, %158 : vector<8x32xf32>
    %cst_87 = arith.constant dense<0.000000e+00> : vector<8xf32>
    %160 = vector.multi_reduction <add>, %159, %cst_87 [1] : vector<8x32xf32> to vector<8xf32>
    %161 = vector.shape_cast %160 : vector<8xf32> to vector<8x1xf32>
    %cst_88 = arith.constant 3.200000e+01 : f32
    %162 = vector.broadcast %cst_88 : f32 to vector<8x1xf32>
    %163 = arith.divf %161, %162 : vector<8x1xf32>
    %164 = vector.broadcast %163 : vector<8x1xf32> to vector<8x32xf32>
    %165 = arith.subf %159, %164 : vector<8x32xf32>
    %166 = arith.mulf %165, %165 : vector<8x32xf32>
    %cst_89 = arith.constant dense<0.000000e+00> : vector<8xf32>
    %167 = vector.multi_reduction <add>, %166, %cst_89 [1] : vector<8x32xf32> to vector<8xf32>
    %168 = vector.shape_cast %167 : vector<8xf32> to vector<8x1xf32>
    %cst_90 = arith.constant 3.200000e+01 : f32
    %169 = vector.broadcast %cst_90 : f32 to vector<8x1xf32>
    %170 = arith.divf %168, %169 : vector<8x1xf32>
    %cst_91 = arith.constant 9.99999974E-6 : f32
    %171 = vector.broadcast %cst_91 : f32 to vector<8x1xf32>
    %172 = arith.addf %170, %171 : vector<8x1xf32>
    %173 = math.rsqrt %172 : vector<8x1xf32>
    %174 = vector.broadcast %173 : vector<8x1xf32> to vector<8x32xf32>
    %175 = arith.mulf %165, %174 : vector<8x32xf32>
    %176 = vector.broadcast %8 : vector<1x32xf32> to vector<8x32xf32>
    %177 = arith.mulf %175, %176 : vector<8x32xf32>
    %178 = vector.broadcast %9 : vector<1x32xf32> to vector<8x32xf32>
    %179 = arith.addf %177, %178 : vector<8x32xf32>
    %180 = arith.truncf %179 : vector<8x32xf32> to vector<8x32xbf16>
    %c0_92 = arith.constant 0 : index
    %c0_93 = arith.constant 0 : index
    %181 = vector.load %arg13[%c0_92, %c0_93] : memref<32x64xbf16, #tpu.memory_space<vmem>>, vector<32x64xbf16>
    %cst_94 = arith.constant dense<0.000000e+00> : vector<8x64xf32>
    %182 = tpu.matmul %180, %181, %cst_94 {dimension_numbers = #tpu.dot_dimension_numbers<[1], [0], [0], [1], [0, 0, 1, 1], [], []>} : vector<8x32xbf16>, vector<32x64xbf16>, vector<8x64xf32> -> vector<8x64xf32>
    %c0_95 = arith.constant 0 : index
    %c0_96 = arith.constant 0 : index
    %183 = vector.load %arg14[%c0_95, %c0_96] : memref<1x64xf32, #tpu.memory_space<vmem>>, vector<1x64xf32>
    %184 = vector.broadcast %183 : vector<1x64xf32> to vector<8x64xf32>
    %185 = arith.addf %182, %184 : vector<8x64xf32>
    %cst_97 = arith.constant 0.000000e+00 : f32
    %186 = vector.broadcast %cst_97 : f32 to vector<8x64xf32>
    %187 = arith.maximumf %185, %186 : vector<8x64xf32>
    %188 = arith.truncf %187 : vector<8x64xf32> to vector<8x64xbf16>
    %c0_98 = arith.constant 0 : index
    %c0_99 = arith.constant 0 : index
    %189 = vector.load %arg15[%c0_98, %c0_99] : memref<64x32xbf16, #tpu.memory_space<vmem>>, vector<64x32xbf16>
    %cst_100 = arith.constant dense<0.000000e+00> : vector<8x32xf32>
    %190 = tpu.matmul %188, %189, %cst_100 {dimension_numbers = #tpu.dot_dimension_numbers<[1], [0], [0], [1], [0, 0, 1, 1], [], []>} : vector<8x64xbf16>, vector<64x32xbf16>, vector<8x32xf32> -> vector<8x32xf32>
    %c0_101 = arith.constant 0 : index
    %c0_102 = arith.constant 0 : index
    %191 = vector.load %arg16[%c0_101, %c0_102] : memref<1x32xf32, #tpu.memory_space<vmem>>, vector<1x32xf32>
    %192 = vector.broadcast %191 : vector<1x32xf32> to vector<8x32xf32>
    %193 = arith.addf %190, %192 : vector<8x32xf32>
    %194 = arith.addf %179, %193 : vector<8x32xf32>
    %cst_103 = arith.constant dense<0.000000e+00> : vector<8xf32>
    %195 = vector.multi_reduction <add>, %194, %cst_103 [1] : vector<8x32xf32> to vector<8xf32>
    %196 = vector.shape_cast %195 : vector<8xf32> to vector<8x1xf32>
    %cst_104 = arith.constant 3.200000e+01 : f32
    %197 = vector.broadcast %cst_104 : f32 to vector<8x1xf32>
    %198 = arith.divf %196, %197 : vector<8x1xf32>
    %199 = vector.broadcast %198 : vector<8x1xf32> to vector<8x32xf32>
    %200 = arith.subf %194, %199 : vector<8x32xf32>
    %201 = arith.mulf %200, %200 : vector<8x32xf32>
    %cst_105 = arith.constant dense<0.000000e+00> : vector<8xf32>
    %202 = vector.multi_reduction <add>, %201, %cst_105 [1] : vector<8x32xf32> to vector<8xf32>
    %203 = vector.shape_cast %202 : vector<8xf32> to vector<8x1xf32>
    %cst_106 = arith.constant 3.200000e+01 : f32
    %204 = vector.broadcast %cst_106 : f32 to vector<8x1xf32>
    %205 = arith.divf %203, %204 : vector<8x1xf32>
    %cst_107 = arith.constant 9.99999974E-6 : f32
    %206 = vector.broadcast %cst_107 : f32 to vector<8x1xf32>
    %207 = arith.addf %205, %206 : vector<8x1xf32>
    %208 = math.rsqrt %207 : vector<8x1xf32>
    %209 = vector.broadcast %208 : vector<8x1xf32> to vector<8x32xf32>
    %210 = arith.mulf %200, %209 : vector<8x32xf32>
    %211 = vector.broadcast %8 : vector<1x32xf32> to vector<8x32xf32>
    %212 = arith.mulf %210, %211 : vector<8x32xf32>
    %213 = vector.broadcast %9 : vector<1x32xf32> to vector<8x32xf32>
    %214 = arith.addf %212, %213 : vector<8x32xf32>
    %c0_108 = arith.constant 0 : index
    %c0_109 = arith.constant 0 : index
    %c0_110 = arith.constant 0 : index
    %215 = vector.load %arg19[%c0_108, %c0_109, %c0_110] : memref<1x8x32xf32, #tpu.memory_space<vmem>>, vector<1x8x32xf32>
    %216 = vector.shape_cast %215 : vector<1x8x32xf32> to vector<8x32xf32>
    %217 = vector.shape_cast %214 : vector<8x32xf32> to vector<1x8x32xf32>
    tpu.vector_store %arg19[%c0_108, %c0_109, %c0_110], %217 {strides = array<i32>} : memref<1x8x32xf32, #tpu.memory_space<vmem>>, vector<1x8x32xf32>,
    return
  }
  func.func @transform_0(%arg0: i32) -> (i32, i32, i32) {
    %c0_i32 = arith.constant 0 : i32
    %c0_i32_0 = arith.constant 0 : i32
    %c0_i32_1 = arith.constant 0 : i32
    return %arg0, %c0_i32, %c0_i32_0 : i32, i32, i32
  }
  func.func @transform_1(%arg0: i32) -> (i32, i32, i32) {
    %c0_i32 = arith.constant 0 : i32
    %c0_i32_0 = arith.constant 0 : i32
    %c0_i32_1 = arith.constant 0 : i32
    return %arg0, %c0_i32, %c0_i32_0 : i32, i32, i32
  }
  func.func @transform_2(%arg0: i32) -> (i32, i32, i32) {
    %c0_i32 = arith.constant 0 : i32
    %c0_i32_0 = arith.constant 0 : i32
    %c0_i32_1 = arith.constant 0 : i32
    return %arg0, %c0_i32, %c0_i32_0 : i32, i32, i32
  }
  func.func @transform_3(%arg0: i32) -> (i32, i32, i32) {
    %c0_i32 = arith.constant 0 : i32
    %c0_i32_0 = arith.constant 0 : i32
    %c0_i32_1 = arith.constant 0 : i32
    return %arg0, %c0_i32, %c0_i32_0 : i32, i32, i32
  }
  func.func @transform_4(%arg0: i32) -> (i32, i32, i32) {
    %c0_i32 = arith.constant 0 : i32
    %c0_i32_0 = arith.constant 0 : i32
    %c0_i32_1 = arith.constant 0 : i32
    %c0_i32_2 = arith.constant 0 : i32
    return %c0_i32, %c0_i32_0, %c0_i32_1 : i32, i32, i32
  }
  func.func @transform_5(%arg0: i32) -> (i32, i32, i32) {
    %c0_i32 = arith.constant 0 : i32
    %c0_i32_0 = arith.constant 0 : i32
    %c0_i32_1 = arith.constant 0 : i32
    %c0_i32_2 = arith.constant 0 : i32
    return %c0_i32, %c0_i32_0, %c0_i32_1 : i32, i32, i32
  }
  func.func @transform_6(%arg0: i32) -> (i32, i32, i32) {
    %c0_i32 = arith.constant 0 : i32
    %c0_i32_0 = arith.constant 0 : i32
    %c0_i32_1 = arith.constant 0 : i32
    %c0_i32_2 = arith.constant 0 : i32
    return %c0_i32, %c0_i32_0, %c0_i32_1 : i32, i32, i32
  }
  func.func @transform_7(%arg0: i32) -> (i32, i32) {
    %c0_i32 = arith.constant 0 : i32
    %c0_i32_0 = arith.constant 0 : i32
    %c0_i32_1 = arith.constant 0 : i32
    return %c0_i32, %c0_i32_0 : i32, i32
  }
  func.func @transform_8(%arg0: i32) -> (i32, i32, i32) {
    %c0_i32 = arith.constant 0 : i32
    %c0_i32_0 = arith.constant 0 : i32
    %c0_i32_1 = arith.constant 0 : i32
    %c0_i32_2 = arith.constant 0 : i32
    return %c0_i32, %c0_i32_0, %c0_i32_1 : i32, i32, i32
  }
  func.func @transform_9(%arg0: i32) -> (i32, i32, i32) {
    %c0_i32 = arith.constant 0 : i32
    %c0_i32_0 = arith.constant 0 : i32
    %c0_i32_1 = arith.constant 0 : i32
    %c0_i32_2 = arith.constant 0 : i32
    return %c0_i32, %c0_i32_0, %c0_i32_1 : i32, i32, i32
  }
  func.func @transform_10(%arg0: i32) -> (i32, i32, i32) {
    %c0_i32 = arith.constant 0 : i32
    %c0_i32_0 = arith.constant 0 : i32
    %c0_i32_1 = arith.constant 0 : i32
    %c0_i32_2 = arith.constant 0 : i32
    return %c0_i32, %c0_i32_0, %c0_i32_1 : i32, i32, i32
  }
  func.func @transform_11(%arg0: i32) -> (i32, i32) {
    %c0_i32 = arith.constant 0 : i32
    %c0_i32_0 = arith.constant 0 : i32
    %c0_i32_1 = arith.constant 0 : i32
    return %c0_i32, %c0_i32_0 : i32, i32
  }
  func.func @transform_12(%arg0: i32) -> (i32, i32) {
    %c0_i32 = arith.constant 0 : i32
    %c0_i32_0 = arith.constant 0 : i32
    %c0_i32_1 = arith.constant 0 : i32
    return %c0_i32, %c0_i32_0 : i32, i32
  }
  func.func @transform_13(%arg0: i32) -> (i32, i32) {
    %c0_i32 = arith.constant 0 : i32
    %c0_i32_0 = arith.constant 0 : i32
    %c0_i32_1 = arith.constant 0 : i32
    return %c0_i32, %c0_i32_0 : i32, i32
  }
  func.func @transform_14(%arg0: i32) -> (i32, i32) {
    %c0_i32 = arith.constant 0 : i32
    %c0_i32_0 = arith.constant 0 : i32
    %c0_i32_1 = arith.constant 0 : i32
    return %c0_i32, %c0_i32_0 : i32, i32
  }
  func.func @transform_15(%arg0: i32) -> (i32, i32) {
    %c0_i32 = arith.constant 0 : i32
    %c0_i32_0 = arith.constant 0 : i32
    %c0_i32_1 = arith.constant 0 : i32
    return %c0_i32, %c0_i32_0 : i32, i32
  }
  func.func @transform_16(%arg0: i32) -> (i32, i32) {
    %c0_i32 = arith.constant 0 : i32
    %c0_i32_0 = arith.constant 0 : i32
    %c0_i32_1 = arith.constant 0 : i32
    return %c0_i32, %c0_i32_0 : i32, i32
  }
  func.func @transform_17(%arg0: i32) -> (i32, i32) {
    %c0_i32 = arith.constant 0 : i32
    %c0_i32_0 = arith.constant 0 : i32
    %c0_i32_1 = arith.constant 0 : i32
    return %c0_i32, %c0_i32_0 : i32, i32
  }
  func.func @transform_18(%arg0: i32) -> (i32, i32, i32) {
    %c0_i32 = arith.constant 0 : i32
    %c0_i32_0 = arith.constant 0 : i32
    %c0_i32_1 = arith.constant 0 : i32
    return %arg0, %c0_i32, %c0_i32_0 : i32, i32, i32
  }
}

</mosaic_0001>

<bundles_post_ra>
// kernel: tpu_custom_call.1
= control target key start
LH: loop header
LB: loop body
LE: loop exit
PB: predicated region body
PF: predicated region fallthrough
CT: control target
= control target key end

     0   :  { %s4335_s0 = inlined_call_operand.hbm [shape: f32[2,8,32], index: 0, kind: input, shape index: {}]   ;;  %s4336_s1 = inlined_call_operand.hbm [shape: f32[2,8,32], index: 1, kind: input, shape index: {}]   ;;  %s4337_s2 = inlined_call_operand.hbm [shape: f32[2,8,8], index: 2, kind: input, shape index: {}]   ;;  %s4338_s3 = inlined_call_operand.hbm [shape: f32[2,1,8], index: 3, kind: input, shape index: {}]   ;;  %s4339_s4 = inlined_call_operand.vmem [shape: bf16[3,32,32], index: 4, kind: input, shape index: {}]   ;;  %s4340_s5 = inlined_call_operand.vmem [shape: f32[3,1,32], index: 5, kind: input, shape index: {}]   ;;  %s4341_s6 = inlined_call_operand.hbm [shape: bf16[4,8,32], index: 6, kind: input, shape index: {}]   ;;  %s4342_s7 = inlined_call_operand.hbm [shape: f32[1,32], index: 7, kind: input, shape index: {}]   ;;  %s4343_s8 = inlined_call_operand.hbm [shape: bf16[3,32,32], index: 8, kind: input, shape index: {}]   ;;  %s4344_s9 = inlined_call_operand.vmem [shape: f32[3,1,32], index: 9, kind: input, shape index: {}]   ;;  %s4345_s10 = inlined_call_operand.hbm [shape: bf16[4,8,32], index: 10, kind: input, shape index: {}]   ;;  %s4346_s11 = inlined_call_operand.vmem [shape: f32[1,32], index: 11, kind: input, shape index: {}]   ;;  %s4347_s12 = inlined_call_operand.hbm [shape: bf16[32,64], index: 12, kind: input, shape index: {}]   ;;  %s4348_s13 = inlined_call_operand.vmem [shape: f32[1,64], index: 13, kind: input, shape index: {}]   ;;  %s4349_s14 = inlined_call_operand.vmem [shape: bf16[64,32], index: 14, kind: input, shape index: {}]   ;;  %s4350_s15 = inlined_call_operand.vmem [shape: f32[1,32], index: 15, kind: input, shape index: {}]   ;;  %s4351_s16 = inlined_call_operand.vmem [shape: f32[1,32], index: 16, kind: input, shape index: {}]   ;;  %s4352_s17 = inlined_call_operand.vmem [shape: f32[1,32], index: 17, kind: input, shape index: {}]   ;;  %s4353_s18 = inlined_call_operand.hbm [shape: f32[2,8,32], index: 18, kind: output, shape index: {}]  }
   0x1   :  { %4374 = sst [smem:[#allocation31_spill]] %s4335_s0 }
   0x2   :  { %4375 = sst [smem:[#allocation32_spill]] %s4336_s1 }
   0x3   :  { %4376 = sst [smem:[#allocation33_spill]] %s4337_s2 }
   0x4   :  { %4377 = sst [smem:[#allocation34_spill]] %s4341_s6 }
   0x5   :  { %4378 = sst [smem:[#allocation35_spill]] %s4342_s7 }
   0x6   :  { %4379 = sst [smem:[#allocation36_spill]] %s4343_s8 }
   0x7   :  { %4380 = sst [smem:[#allocation37_spill]] %s4344_s9 }
   0x8   :  { %4381 = sst [smem:[#allocation38_spill]] %s4345_s10 }
   0x9   :  { %4382 = sst [smem:[#allocation39_spill]] %s4346_s11 }
   0xa   :  { %4383 = sst [smem:[#allocation40_spill]] %s4347_s12 }
   0xb   :  { %4384 = sst [smem:[#allocation41_spill]] %s4348_s13 }
   0xc   :  { %4385 = sst [smem:[#allocation42_spill]] %s4349_s14 }
   0xd   :  { %4386 = sst [smem:[#allocation43_spill]] %s4350_s15 }
   0xe   :  { %4387 = sst [smem:[#allocation44_spill]] %s4352_s17 }
   0xf   :  { %4388 = sst [smem:[#allocation45_spill]] %s4353_s18 }
  0x10   :  { %23 = vsyncpa [#allocation3], 0 }
  0x11   :  { %25 = vsyncpa [#allocation3 + $0x1], 0 }
  0x12   :  { %26 = vsyncpa [#allocation6], 0 }
  0x13   :  { %28 = vsyncpa [#allocation6 + $0x1], 0 }
  0x14   :  { %29 = vsyncpa [#allocation9], 0 }
  0x15   :  { %31 = vsyncpa [#allocation9 + $0x1], 0 }
  0x16   :  { %32 = vsyncpa [#allocation12], 0 }
  0x17   :  { %33 = vsyncpa [#allocation15], 0 }
  0x18   :  { %34 = vsyncpa [#allocation4], 0 }
  0x19   :  { %36 = vsyncpa [#allocation4 + $0x1], 0  ;;  %s3880_s27 = smov 0   ;;  %s3882_s28 = smov 0  }
  0x1a   :  { %s3884_s29 = smov 0   ;;  %s3886_s30 = smov 0  }
  0x1b LB: > { %4389 = sst [smem:[#allocation25_spill]] %s3762_s27  ;;  %s3904_s20 = sadd.s32 4294967295, %s3774_s30   ;;  %s3774_s30 = sphi %s3886_s30, %s4431_s30   ;;  %s3770_s29 = sphi %s3884_s29, %s4433_s29   ;;  %s3766_s28 = sphi %s3882_s28, %s4435_s28   ;;  %s3762_s27 = sphi %s3880_s27, %s4434_s27  }
  0x1c   : > { %4390 = sst [smem:[#allocation26_spill]] %s3770_s29  ;;  %p2981_p0 = scmp.ge.s32.totalorder %s3774_s30, 1 }
  0x1d   : > { %s4391_s6 = sld [smem:[#allocation34_spill]]  ;;  %p4370_p1 = scmp.eq.s32.totalorder %s3904_s20, 0 }
  0x1e   : > { %p471_p2 = scmp.lt.s32.totalorder %s3774_s30, 3  ;;  %s3776_s22 = smov [#allocation10]  }
  0x1f   : > { %s490_s2 = sshll.u32 %s3776_s22, 4  ;;  %s4393_s7 = sld [smem:[#allocation35_spill]]  ;;  %s491_s2 = int_to_ptr.vmem [resolvable:$true] %s490_s2 }
  0x20   : > { %p3909_p3 = pnand %p2981_p0, %p471_p2  ;;  %s4395_s10 = sld [smem:[#allocation38_spill]] }
  0x21   : > { %s4357_s24 = smov 64   ;;  %s3780_s0 = smov [#allocation14]  }
  0x22   : > { %p3172_p4 = pneg %p3909_p3  ;;  %s533_s19 = sshll.u32 %s3780_s0, 4  ;;  %s534_s19 = int_to_ptr.vmem [resolvable:$true] %s533_s19 }
  0x23   : > { %s488_s1 = sshll.u32 %s4391_s6, 4  ;;  %s3777_s6 = smov [#allocation11]   ;;  %s489_s1 = int_to_ptr.hbm [resolvable:$true] %s488_s1 }
  0x24   : > { %p3921_p6 = pnand %p3172_p4, %p4370_p1  ;;  %s505_s23 = sshll.u32 %s3777_s6, 4  ;;  %s506_s23 = int_to_ptr.vmem [resolvable:$true] %s505_s23 }
  0x25   : > { %s503_s25 = sshll.u32 %s4393_s7, 4  ;;  %s4359_s7 = smov 4   ;;  %s504_s25 = int_to_ptr.hbm [resolvable:$true] %s503_s25 }
  0x26   : > { %s531_s22 = sshll.u32 %s4395_s10, 4  ;;  %s2980_s6 = sadd.s32 4294967294, %s3774_s30   ;;  %s532_s22 = int_to_ptr.hbm [resolvable:$true] %s531_s22 }
  0x27   : > { %3175 = dma.hbm_to_vmem [thread:$0]  (!%p3921_p6), %s489_s1, 256, %s491_s2, [#allocation9], %s4357_s24, %s4357_s24, %s4359_s7  }
  0x28   : > { %3178 = dma.hbm_to_vmem [thread:$0]  (!%p3921_p6), %s504_s25, 16, %s506_s23, [#allocation12]  }
  0x29   : > { %3184 = dma.hbm_to_vmem [thread:$0]  (!%p3921_p6), %s532_s22, 256, %s534_s19, [#allocation15], %s4357_s24, %s4357_s24, %s4359_s7  }
  0x2a   : > { %s3942_s10 = sadd.s32 1, %s3774_s30   ;;  %s49_s1 = sadd.s32 1, %s3770_s29 }
  0x2b   : > { %4396 = sst [smem:[#allocation27_spill]] %s3942_s10  ;;  %s46_s2 = ssub.s32 %s3774_s30, %s3942_s10 }
  0x2c   : > { %p56_p7 = scmp.ne.s32.totalorder %s3770_s29, %s3766_s28  ;;  %p47_p8 = scmp.eq.s32.totalorder %s46_s2, 0 }
  0x2d   : > { %p57_p9 = scmp.eq.s32.totalorder %s3774_s30, 0  ;;  %p62_p10 = scmp.ne.s32.totalorder %s3766_s28, %s3762_s27 }
  0x2e   : > { %p458_p11 = scmp.eq.s32.totalorder %s3904_s20, 1  ;;  %p464_p2 = scmp.eq.s32.totalorder %s2980_s6, 1 }
  0x2f   : > { %s3954_s25 = scalar_select %p47_p8, %s3770_s29, %s49_s1  }
  0x30   : > { %p58_p12 = por %p57_p9, %p56_p7  ;;  %p3958_p13 = por %p4370_p1, %p62_p10 }
  0x31   : > { %4397 = sst [smem:[#allocation28_spill]] %s3954_s25  ;;  %p3962_p0 = por %p458_p11, %p56_p7 }
  0x32   : > { %p3210_p4 = scmp.lt.s32.totalorder %s3774_s30, 2  ;;  %s3968_s0 = sand.u32 1, %s3770_s29  }
  0x33   : > { %s4399_s23 = scalar_select %p3962_p0, 1, 0 }
  0x34   : > { %p3970_p5 = por %p464_p2, %p62_p10  ;;  %s3975_s1 = sshll.u32 %s3968_s0, 3 }
  0x35   : > { %4400 = sst [smem:[#allocation29_spill]] %s4399_s23  ;;  %s3978_s2 = sshll.u32 %s3774_s30, 3 }
  0x36   : > { %s4401_s19 = scalar_select %p3970_p5, 1, 0 }
  0x37   : > { %p3980_p8 = pnand %p3210_p4, %p58_p12  ;;  %s4371_s6 = sand.u32 1, %s3774_s30  }
  0x38   : > { %4402 = sst [smem:[#allocation30_spill]] %s4401_s19  ;;  %s602_s23 = scalar_lea.vmem [#allocation5], %s3975_s1 }
  0x39   : > { %s4404_s29 = sld [smem:[#allocation32_spill]]  ;;  %s610_s18 = sshll.u32 %s602_s23, 4  ;;  %s611_s18 = int_to_ptr.vmem [resolvable:$true] %s610_s18 }
  0x3a   : > { %s3992_s15 = scalar_lea.sflag [#allocation6], %s4371_s6  ;;  %p3512_p9 = pneg %p3980_p8 }
  0x3f   : > { %s4405_s10 = smov %s4404_s29  ;;  %s606_s27 = scalar_lea.hbm %s4404_s29, %s3978_s2 }
  0x40   : > { %s608_s19 = sshll.u32 %s606_s27, 4  ;;  %s3515_s25 = scalar_lea.hbm %s4405_s10, 16  ;;  %s609_s19 = int_to_ptr.hbm [resolvable:$true] %s608_s19 }
  0x41   : > { %s3508_s13 = sshra.s32 %s609_s19, 4  ;;  %s3509_s13 = int_to_ptr.hbm [resolvable:$true] %s3508_s13 }
  0x42   : > { %s3510_s14 = scalar_lea.hbm %s3509_s13, 8  ;;  %p3516_p12 = scmp.lt.s32.totalorder %s3509_s13, %s4405_s10 }
  0x43   : > { %p3511_p7 = scmp.ne.s32.totalorder %s3509_s13, %s3510_s14  ;;  %p3517_p2 = scmp.lt.s32.totalorder %s3515_s25, %s3510_s14 }
  0x45   : > { %p3513_p10 = pnand %p3512_p9, %p3511_p7  ;;  %p3518_p4 = por %p3517_p2, %p3516_p12 }
  0x47   : > { %p3514_p11 = pneg %p3513_p10 }
  0x49   : > { %p3519_p1 = pnand %p3518_p4, %p3514_p11 }
  0x4b   : > { %3522 = shalt.err (!%p3519_p1)
}
  0x4c   : > { %3194 = dma.hbm_to_vmem [thread:$0]  (!%p3980_p8), %s609_s19, 128, %s611_s18, %s3992_s15  }
  0x4d   : > { %s4406_s8 = sld [smem:[#allocation36_spill]]  ;;  %s3781_s29 = smov [#allocation13]  }
  0x4e   : > { %s516_s13 = sshll.u32 %s3781_s29, 4  ;;  %s4407_s12 = sld [smem:[#allocation40_spill]]  ;;  %s517_s13 = int_to_ptr.vmem [resolvable:$true] %s516_s13 }
  0x4f   : > { %s4408_s23 = smov 4   ;;  %s4409_s10 = smov 64  }
  0x50   : > { %s3782_s18 = smov [#allocation16]   ;;  %s4410_s29 = sld [smem:[#allocation31_spill]] }
  0x51   : > { %s550_s19 = sshll.u32 %s3782_s18, 4  ;;  %s583_s25 = scalar_lea.vmem [#allocation2], %s3975_s1  ;;  %s551_s19 = int_to_ptr.vmem [resolvable:$true] %s550_s19 }
  0x53   : > { %s514_s7 = sshll.u32 %s4406_s8, 4  ;;  %s515_s7 = int_to_ptr.hbm [resolvable:$true] %s514_s7 }
  0x54   : > { %s548_s27 = sshll.u32 %s4407_s12, 4  ;;  %s591_s12 = sshll.u32 %s583_s25, 4  ;;  %s549_s27 = int_to_ptr.hbm [resolvable:$true] %s548_s27  ;;  %s592_s12 = int_to_ptr.vmem [resolvable:$true] %s591_s12 }
  0x55   : > { %3181 = dma.hbm_to_vmem [thread:$0]  (!%p3921_p6), %s515_s7, 768, %s517_s13, [#allocation12], %s4409_s10, %s4409_s10, %s4408_s23  }
  0x56   : > { %3187 = dma.hbm_to_vmem [thread:$0]  (!%p3921_p6), %s549_s27, 256, %s551_s19, [#allocation15], %s4409_s10, %s4409_s10, %s4408_s23  }
  0x57   : > { %s4411_s8 = smov %s4410_s29  ;;  %s587_s14 = scalar_lea.hbm %s4410_s29, %s3978_s2 }
  0x58   : > { %s589_s9 = sshll.u32 %s587_s14, 4  ;;  %s580_s7 = scalar_lea.sflag [#allocation3], %s3968_s0  ;;  %s590_s9 = int_to_ptr.hbm [resolvable:$true] %s589_s9 }
  0x59   : > { %s3598_s13 = sshra.s32 %s590_s9, 4  ;;  %s3605_s27 = scalar_lea.hbm %s4411_s8, 16  ;;  %s3599_s13 = int_to_ptr.hbm [resolvable:$true] %s3598_s13 }
  0x5a   : > { %s3600_s17 = scalar_lea.hbm %s3599_s13, 8  ;;  %p3606_p6 = scmp.lt.s32.totalorder %s3599_s13, %s4411_s8 }
  0x5b   : > { %p3601_p1 = scmp.ne.s32.totalorder %s3599_s13, %s3600_s17  ;;  %p3607_p11 = scmp.lt.s32.totalorder %s3605_s27, %s3600_s17 }
  0x5d   : > { %p3603_p7 = pnand %p3601_p1, %p3512_p9  ;;  %p3608_p12 = por %p3607_p11, %p3606_p6 }
  0x5f   : > { %p3604_p10 = pneg %p3603_p7 }
  0x61   : > { %p3609_p2 = pnand %p3608_p12, %p3604_p10 }
  0x63   : > { %3612 = shalt.err (!%p3609_p2)
}
  0x64   : > { %3191 = dma.hbm_to_vmem [thread:$0]  (!%p3980_p8), %s590_s9, 128, %s592_s12, %s580_s7  }
  0x65   : > { %s4412_s6 = sld [smem:[#allocation33_spill]]  ;;  %s621_s14 = scalar_lea.vmem [#allocation7], %s3975_s1 }
  0x66   : > { %s629_s25 = sshll.u32 %s621_s14, 4  ;;  %s630_s25 = int_to_ptr.vmem [resolvable:$true] %s629_s25 }
  0x6b   : > { %s625_s29 = scalar_lea.hbm %s4412_s6, %s3978_s2  ;;  %s3635_s9 = scalar_lea.hbm %s4412_s6, 16 }
  0x6c   : > { %s627_s26 = sshll.u32 %s625_s29, 4  ;;  %s628_s26 = int_to_ptr.hbm [resolvable:$true] %s627_s26 }
  0x6d   : > { %s3628_s13 = sshra.s32 %s628_s26, 4  ;;  %s3629_s13 = int_to_ptr.hbm [resolvable:$true] %s3628_s13 }
  0x6e   : > { %s3630_s17 = scalar_lea.hbm %s3629_s13, 8  ;;  %p3636_p10 = scmp.lt.s32.totalorder %s3629_s13, %s4412_s6 }
  0x6f   : > { %p3631_p4 = scmp.ne.s32.totalorder %s3629_s13, %s3630_s17  ;;  %p3637_p6 = scmp.lt.s32.totalorder %s3635_s9, %s3630_s17 }
  0x71   : > { %p3633_p1 = pnand %p3631_p4, %p3512_p9  ;;  %p3638_p11 = por %p3637_p6, %p3636_p10 }
  0x73   : > { %p3634_p7 = pneg %p3633_p1 }
  0x75   : > { %p3639_p12 = pnand %p3638_p11, %p3634_p7 }
  0x77   : > { %3642 = shalt.err (!%p3639_p12)
}
  0x78   : > { %3197 = dma.hbm_to_vmem [thread:$0]  (!%p3980_p8), %s628_s26, 128, %s630_s25, %s3992_s15  }
  0x79   : > { %s642_s23 = scalar_lea.hbm %s4338_s3, %s3774_s30  ;;  %s639_s18 = scalar_lea.vmem [#allocation8], %s3968_s0 }
  0x7a   : > { %s646_s19 = sshll.u32 %s639_s18, 4  ;;  %s644_s11 = sshll.u32 %s642_s23, 4  ;;  %s647_s19 = int_to_ptr.vmem [resolvable:$true] %s646_s19  ;;  %s645_s11 = int_to_ptr.hbm [resolvable:$true] %s644_s11 }
  0x7b   : > { %s4413_s29 = sand.u32 1, %s3774_s30   ;;  %s3658_s13 = sshra.s32 %s645_s11, 4  ;;  %s3659_s13 = int_to_ptr.hbm [resolvable:$true] %s3658_s13 }
  0x7c   : > { %s637_s14 = scalar_lea.sflag [#allocation9], %s4413_s29  ;;  %s3660_s17 = scalar_lea.hbm %s3659_s13, 1 }
  0x7d   : > { %p3661_p2 = scmp.ne.s32.totalorder %s3659_s13, %s3660_s17  ;;  %s3665_s26 = scalar_lea.hbm %s4338_s3, 2 }
  0x7e   : > { %p3666_p7 = scmp.lt.s32.totalorder %s3659_s13, %s4338_s3  ;;  %p3667_p10 = scmp.lt.s32.totalorder %s3665_s26, %s3660_s17 }
  0x7f   : > { %p3663_p4 = pnand %p3661_p2, %p3512_p9 }
  0x80   : > { %p3668_p6 = por %p3667_p10, %p3666_p7 }
  0x81   : > { %p3664_p1 = pneg %p3663_p4 }
  0x83   : > { %p3669_p11 = pnand %p3668_p6, %p3664_p1 }
  0x85   : > { %3672 = shalt.err (!%p3669_p11)
}
  0x86   : > { %3200 = dma.hbm_to_vmem [thread:$0]  (!%p3980_p8), %s645_s11, 16, %s647_s19, %s637_s14  }
  0x87   : > { %655 = sbr.rel (%p3909_p3) target bundleno = 4129 (0x1021), region = 92  ;;  %s4079_s27 = sand.u32 (!%p3909_p3), 1, %s3766_s28  }
  0x88   : > { %s4082_s9 = sshll.u32 (!%p3909_p3), %s4079_s27, 3  ;;  %s658_s12 = scalar_lea.sflag (!%p3909_p3), [#allocation3], %s4079_s27 }
  0x89   : > { %s661_s7 = scalar_lea.vmem (!%p3909_p3), [#allocation2], %s4082_s9 }
  0x8c   : > { %3733 = dma.done.wait (%p3958_p13), %s658_s12, 128  }
  0x8d   : > { %3735 = vsyncadd (%p3958_p13), %s658_s12, 4294967168  ;;  %s667_s21 = sand.u32 1, %s3904_s20   ;;  %s671_s1 = scalar_lea.vmem [#allocation5], %s4082_s9 }
  0x8e   : > { %s668_s24 = scalar_lea.sflag [#allocation6], %s667_s21 }
  0x8f   : > { %3737 = dma.done.wait (%p3958_p13), %s668_s24, 256  }
  0x90   : > { %3739 = vsyncadd (%p3958_p13), %s668_s24, 4294967040  ;;  %s681_s2 = scalar_lea.vmem [#allocation7], %s4082_s9  ;;  %s688_s23 = scalar_lea.sflag [#allocation9], %s667_s21 }
  0x91   : > { %s690_s18 = scalar_lea.vmem [#allocation8], %s4079_s27 }
  0x92   : > { %3741 = dma.done.wait (%p3958_p13), %s688_s23, 16  }
  0x93   : > { %3743 = vsyncadd (%p3958_p13), %s688_s23, 4294967280  ;;  %p4414_p3 = scmp.eq.s32.totalorder %s3904_s20, 0 }
  0x95   : > { %3745 = dma.done.wait (%p4414_p3), [#allocation9], 256   ;;  %p4415_p8 = pmov %p4414_p3 }
  0x96   : > { %p4416_p9 = pmov %p4414_p3 }
  0x97   : > { %3747 = vsyncadd (%p4415_p8), [#allocation9], 4294967040 }
  0x98   : > { %3749 = dma.done.wait (%p4416_p9), [#allocation12], 784   ;;  %p4417_p12 = pmov %p4414_p3 }
  0x99   : > { %p4418_p2 = pmov %p4414_p3 }
  0x9a   : > { %3751 = vsyncadd (%p4417_p12), [#allocation12], 4294966512 }
  0x9b   : > { %3753 = dma.done.wait (%p4418_p2), [#allocation15], 512   ;;  %p4419_p4 = pmov %p4418_p2 }
  0x9c   : > { %v3125_v0 = vld [vmem:[%s4339_s4 + $0x8] sm:$0xff]  ;;  %v3127_v1 = vld [vmem:[%s4339_s4 + $0x18] sm:$0xff]  ;;  %v3124_v2 = vld [vmem:[%s4339_s4] sm:$0xff]  ;;  %vm811_vm0 = vcmask 261120   ;;  %vm1391_vm1 = vcmask 64512   ;;  %vm1526_vm3 = vcmask 1043456  }
  0x9d   : > { %3755 = vsyncadd (%p4419_p4), [#allocation15], 4294966784  ;;  %v3126_v3 = vld [vmem:[%s4339_s4 + $0x10] sm:$0xff]  ;;  %821 = vmatpush.bf16.msra.mxu0 %v3125_v0  ;;  %856 = vmatpush.bf16.msra.mxu1 %v3127_v1  ;;  %v4126_v4 = vld [vmem:[%s661_s7] sm:$0xff]  ;;  %s4420_s29 = sld [smem:[#allocation44_spill]]  ;;  %vm2742_vm13 = vcmask 523264  }
  0x9e   : > { %v790_v5 = vpack.c.bf16 %v4126_v4, %v4126_v4  ;;  %v3366_v6 = vld [vmem:[%s4340_s5] ss:$0 sm:$0xff]  ;;  %v3367_v7 = vld [vmem:[%s4340_s5 + $0x1] ss:$0 sm:$0xff]  ;;  %v3129_v19 = vld [vmem:[%s4339_s4 + $0x28] sm:$0xff]  ;;  %s4421_s17 = sld [smem:[#allocation37_spill]] }
  0x9f   : > { %891 = vmatpush.bf16.msra.mxu2 %v3129_v19  ;;  %v3128_v31 = vld [vmem:[%s4339_s4 + $0x20] sm:$0xff]  ;;  %s4422_s12 = sld [smem:[#allocation39_spill]]  ;;  %s3121_s26 = sshll.u32 %s3904_s20, 3 }
  0xa0   : > { %v786_v56 = vld [vmem:[%s681_s2] sm:$0xff]  ;;  %s4423_s24 = sld [smem:[#allocation42_spill]]  ;;  %s782_s2 = scalar_lea.vmem [#allocation17], %s4082_s9 }
  0xa1   : > { %822 = vmatpush.bf16.msra.mxu0 %v3124_v2  ;;  %857 = vmatpush.bf16.msra.mxu1 %v3126_v3  ;;  %vm1468_vm2 = vcmp.eq.f32.partialorder %v786_v56, 0.0  ;;  %s4424_s13 = sld [smem:[#allocation41_spill]]  ;;  %s2798_s23 = sshll.u32 %s782_s2, 4  ;;  %s2799_s23 = int_to_ptr.vmem [resolvable:$true] %s2798_s23 }
  0xa2   : > { %s2786_s20 = scalar_lea.sflag [#allocation4], %s4079_s27 }
  0xa3   : > { %892 = vmatpush.bf16.msra.mxu2 %v3128_v31 }
  0xa4   : > { %3012 = vmatmul.msk.bf16.vlgmr.msra.gmra.mxu0 %vm811_vm0, %v790_v5  ;;  %3026 = vmatmul.msk.bf16.vlgmr.msra.gmra.mxu1 %vm811_vm0, %v790_v5 }
  0xa6   : > { %3040 = vmatmul.msk.bf16.vlgmr.msra.gmra.mxu2 %vm811_vm0, %v790_v5 }
 0x121   : > { %v824_v8 = vpop.f32.mrf.mxu0  ;;  %v859_v9 = vpop.f32.mrf.mxu1 }
 0x122   : > { %v825_v10 = vadd.f32 %v3366_v6, %v824_v8  ;;  %v860_v11 = vadd.f32 %v3367_v7, %v859_v9 }
 0x124   : > { %v898_v12 = vmul.f32 0.35355338, %v825_v10 }
 0x126   : > { %v3259_v13 = vpack.i.bf16 %v898_v12, %v860_v11 }
 0x128   : > { %3260 = vxpose.xlu0.b32.start.end [1/1] (short) (narrow) %v3259_v13, 32 }
 0x129   : > { %v826_v14 = vpop.f32.mrf.mxu0  ;;  %v861_v15 = vpop.f32.mrf.mxu1 }
 0x12a   : > { %v894_v54 = vpop.f32.mrf.mxu2 }
 0x132   : > { %v896_v55 = vpop.f32.mrf.mxu2 }
 0x1cc   : > { %v3261_v16 = vpop.trf.xlu0 }
 0x1cd   : > { %v3262_v17 = vunpack.i.l.bf16 %v3261_v16  ;;  %v3265_v27 = vunpack.i.h.bf16 %v3261_v16 }
 0x1cf   : > { %1095 = vxpose.xlu0.b32.start.end [1/1] (short) (narrow) %v3262_v17, 8 }
 0x1d4   : > { %v3266_v18 = vpop.trf.xlu0 }
 0x1d5   : > { %v3267_v25 = vunpack.i.l.bf16 %v3266_v18  ;;  %v3270_v29 = vunpack.i.h.bf16 %v3266_v18 }
 0x1dc   : > { %v3271_v20 = vpop.trf.xlu0 }
 0x1dd   : > { %v3272_v24 = vunpack.i.l.bf16 %v3271_v20  ;;  %v3275_v28 = vunpack.i.h.bf16 %v3271_v20 }
 0x1df   : > { %v3281_v26 = vpack.i.bf16 %v3272_v24, %v3267_v25  ;;  %v3288_v30 = vpack.i.bf16 %v3275_v28, %v3270_v29 }
 0x1e4   : > { %v3276_v21 = vpop.trf.xlu0 }
 0x1e5   : > { %v3280_v22 = vunpack.i.h.bf16 %v3276_v21  ;;  %v3277_v23 = vunpack.i.l.bf16 %v3276_v21 }
 0x1e7   : > { %1027 = vxpose.xlu2.b32.start.end [1/1] (short) (narrow) %v3280_v22, 8  ;;  %1191 = vxpose.xlu1.b32.start.end [1/1] (short) (narrow) %v3277_v23, 8 }
 0x1ef   : > { %3282 = vxpose.xlu2.b32.start.end [1/1] (short) (narrow) %v3281_v26, 8  ;;  %931 = vxpose.xlu1.b32.start.end [1/1] (short) (narrow) %v3265_v27, 8 }
 0x1f7   : > { %3289 = vxpose.xlu1.b32.start.end [1/1] (short) (narrow) %v3288_v30, 8  ;;  %v3368_v30 = vld [vmem:[%s4340_s5 + $0x2] ss:$0 sm:$0xff] }
 0x1f8   : > { %v895_v31 = vadd.f32 %v3368_v30, %v894_v54 }
 0x273   : > { %v1111_v32 = vpop.trf.xlu0 }
 0x274   : > { %v1223_v33 = vpack.c.bf16 %v1111_v32, %v1111_v32 }
 0x276   : > { %v1396_v34 = vsel %vm1391_vm1, %v1223_v33, 0 }
 0x277   : > { %1405 = vmatpush.bf16.xpose.msra.mxu3 %v1396_v34 }
 0x280   : > { %v1043_v35 = vpop.trf.xlu2 }
 0x281   : > { %v1062_v46 = vpack.c.bf16 %v1043_v35, %v1043_v35 }
 0x288   : > { %v3283_v36 = vpop.trf.xlu2 }
 0x289   : > { %v3284_v37 = vunpack.i.l.bf16 %v3283_v36  ;;  %v3287_v38 = vunpack.i.h.bf16 %v3283_v36 }
 0x28b   : > { %v1207_v39 = vpop.trf.xlu1  ;;  %v1224_v40 = vpack.c.bf16 %v3284_v37, %v3284_v37  ;;  %v1225_v41 = vpack.c.bf16 %v3287_v38, %v3287_v38 }
 0x28c   : > { %v1226_v42 = vpack.c.bf16 %v1207_v39, %v1207_v39 }
 0x28d   : > { %v1415_v43 = vsel %vm1391_vm1, %v1224_v40, 0  ;;  %v1434_v44 = vsel %vm1391_vm1, %v1225_v41, 0 }
 0x28e   : > { %v1453_v45 = vsel %vm1391_vm1, %v1226_v42, 0  ;;  %1424 = vmatpush.bf16.xpose.msrb.mxu0 %v1415_v43  ;;  %1443 = vmatpush.bf16.xpose.msrb.mxu1 %v1434_v44 }
 0x28f   : > { %1462 = vmatpush.bf16.xpose.msrb.mxu2 %v1453_v45 }
 0x293   : > { %v947_v47 = vpop.trf.xlu1 }
 0x294   : > { %v1059_v48 = vpack.c.bf16 %v947_v47, %v947_v47 }
 0x296   : > { %3041 = vmatmul.msk.bf16.vlgmr.msra.gmra.mxu3 %vm1391_vm1, %v1059_v48  ;;  %3044 = vmatmul.msk.bf16.vlgmr.msrb.gmra.mxu2 %vm1391_vm1, %v1062_v46 }
 0x29b   : > { %v3290_v49 = vpop.trf.xlu1 }
 0x29c   : > { %v3294_v50 = vunpack.i.h.bf16 %v3290_v49  ;;  %v3291_v51 = vunpack.i.l.bf16 %v3290_v49 }
 0x29e   : > { %v1061_v52 = vpack.c.bf16 %v3294_v50, %v3294_v50  ;;  %v1060_v53 = vpack.c.bf16 %v3291_v51, %v3291_v51 }
 0x2a0   : > { %3042 = vmatmul.msk.bf16.vlgmr.msrb.gmra.mxu0 %vm1391_vm1, %v1060_v53  ;;  %3043 = vmatmul.msk.bf16.vlgmr.msrb.gmra.mxu1 %vm1391_vm1, %v1061_v52 }
 0x319   : > { %v1407_v57 = vpop.f32.mrf.mxu3  ;;  %v1464_v58 = vpop.f32.mrf.mxu2 }
 0x31a   : > { %v1471_v59 = vsel %vm1468_vm2, -1e+10, %v1407_v57  ;;  %v1474_v6 = vsel %vm1468_vm2, -1e+10, %v1464_v58 }
 0x31b   : > { %v1475_v60 = vsel %vm1391_vm1, %v1471_v59, -inf  ;;  %v1484_v7 = vsel %vm1391_vm1, %v1474_v6, -inf }
 0x31c   : > { %1476 = vmax.xlane.f32.xlu2 %v1475_v60 }
 0x31d   : > { %v1426_v61 = vpop.f32.mrf.mxu0  ;;  %v1445_v62 = vpop.f32.mrf.mxu1 }
 0x31e   : > { %v1472_v63 = vsel %vm1468_vm2, -1e+10, %v1426_v61  ;;  %v1473_v0 = vsel %vm1468_vm2, -1e+10, %v1445_v62 }
 0x31f   : > { %v1481_v1 = vsel %vm1391_vm1, %v1473_v0, -inf  ;;  %v1478_v2 = vsel %vm1391_vm1, %v1472_v63, -inf }
 0x320   : > { %1482 = vmax.xlane.f32.xlu1 %v1481_v1  ;;  %1479 = vmax.xlane.f32.xlu0 %v1478_v2  ;;  %v1604_v2 = vld [vmem:[#allocation10] sm:$0xf] }
 0x321   : > { %v1409_v3 = vpop.f32.mrf.mxu3  ;;  %v1466_v5 = vpop.f32.mrf.mxu2 }
 0x322   : > { %v1612_v3 = vsel %vm1526_vm3, %v1604_v2, 0  ;;  %v1607_v5 = vld [vmem:[#allocation10 + $0xc] sm:$0xf] }
 0x325   : > { %v1428_v8 = vpop.f32.mrf.mxu0  ;;  %v1447_v9 = vpop.f32.mrf.mxu1 }
 0x326   : > { %v1606_v8 = vld [vmem:[#allocation10 + $0x8] sm:$0xf] }
 0x328   : > { %1485 = vmax.xlane.f32.xlu1 %v1484_v7  ;;  %v1605_v7 = vld [vmem:[#allocation10 + $0x4] sm:$0xf] }
 0x329   : > { %v1631_v9 = vsel %vm1526_vm3, %v1605_v7, 0  ;;  %v4208_v7 = vld [vmem:[%s4420_s29] ss:$0 sm:$0xff] }
 0x38f   : > { %v1477_v10 = vpop.xlane.xlu2 %1476 }
 0x390   : > { %v1487_v11 = vsub.f32 %v1471_v59, %v1477_v10  ;;  %v1650_v10 = vsel %vm1526_vm3, %v1606_v8, 0 }
 0x392   : > { %v1491_v12 = vmul.f32 1.442695, %v1487_v11 }
 0x393   : > { %v1483_v13 = vpop.xlane.xlu1 %1482  ;;  %v1480_v14 = vpop.xlane.xlu0 %1479 }
 0x394   : > { %3378 = vpow2.f32 %v1491_v12  ;;  %v1488_v15 = vsub.f32 %v1472_v63, %v1480_v14  ;;  %v1489_v17 = vsub.f32 %v1473_v0, %v1483_v13 }
 0x396   : > { %v1493_v16 = vmul.f32 1.442695, %v1488_v15  ;;  %v1495_v19 = vmul.f32 1.442695, %v1489_v17 }
 0x398   : > { %3380 = vpow2.f32 %v1493_v16 }
 0x399   : > { %3382 = vpow2.f32 %v1495_v19 }
 0x39a   : > { %v3379_v18 = vpop.eup %3378 }
 0x39b   : > { %v1499_v20 = vsel %vm1391_vm1, %v3379_v18, 0.0  ;;  %v1486_v21 = vpop.xlane.xlu1 %1485 }
 0x39c   : > { %1500 = vadd.xlane.f32.xlu1 %v1499_v20  ;;  %v1490_v23 = vsub.f32 %v1474_v6, %v1486_v21  ;;  %v1669_v6 = vsel %vm1526_vm3, %v1607_v5, 0  ;;  %v4203_v5 = vld [vmem:[%s4351_s16] ss:$0 sm:$0xff] }
 0x39e   : > { %v3381_v22 = vpop.eup %3380  ;;  %v1497_v25 = vmul.f32 1.442695, %v1490_v23 }
 0x39f   : > { %v1502_v24 = vsel %vm1391_vm1, %v3381_v22, 0.0  ;;  %v3383_v26 = vpop.eup %3382 }
 0x3a0   : > { %1503 = vadd.xlane.f32.xlu2 %v1502_v24  ;;  %3384 = vpow2.f32 %v1497_v25  ;;  %v1505_v27 = vsel %vm1391_vm1, %v3383_v26, 0.0 }
 0x3a6   : > { %v3385_v28 = vpop.eup %3384 }
 0x3a7   : > { %v1508_v29 = vsel %vm1391_vm1, %v3385_v28, 0.0 }
 0x3a8   : > { %1506 = vadd.xlane.f32.xlu2 %v1505_v27 }
 0x3b0   : > { %1509 = vadd.xlane.f32.xlu2 %v1508_v29 }
 0x3d6   : > { %1227 = vxpose.xlu1.b32.start.end [1/1] (short) (narrow) %v895_v31, 32 }
 0x40f   : > { %v1501_v32 = vpop.xlane.xlu1 %1500 }
 0x410   : > { %3386 = vrcp.f32 %v1501_v32 }
 0x413   : > { %v1504_v38 = vpop.xlane.xlu2 %1503 }
 0x416   : > { %v3387_v40 = vpop.eup %3386 }
 0x417   : > { %v1515_v42 = vmul.f32 %v3387_v40, %v3379_v18 }
 0x419   : > { %v1519_v46 = vpack.c.bf16 %v1515_v42, %v1515_v42  ;;  %v3783_v42 = vmov 32.0  }
 0x41b   : > { %v1507_v39 = vpop.xlane.xlu2 %1506 }
 0x423   : > { %v1510_v44 = vpop.xlane.xlu2 %1509 }
 0x424   : > { %3388 = vrcp.f32 %v1510_v44 }
 0x425   : > { %3390 = vrcp.f32 %v1504_v38 }
 0x426   : > { %3392 = vrcp.f32 %v1507_v39 }
 0x427   : > { %3394 = vrcp.f32 %v3783_v42 }
 0x42a   : > { %v3389_v47 = vpop.eup %3388 }
 0x42b   : > { %v1518_v49 = vmul.f32 %v3389_v47, %v3385_v28  ;;  %v3391_v52 = vpop.eup %3390 }
 0x42c   : > { %v3393_v53 = vpop.eup %3392  ;;  %v1516_v58 = vmul.f32 %v3391_v52, %v3381_v22 }
 0x42d   : > { %v1522_v54 = vpack.c.bf16 %v1518_v49, %v1518_v49  ;;  %v1517_v59 = vmul.f32 %v3393_v53, %v3383_v26  ;;  %v3131_v53 = vld [vmem:[#allocation13 + $0x8] sm:$0xff] }
 0x42e   : > { %v1520_v0 = vpack.c.bf16 %v1516_v58, %v1516_v58 }
 0x42f   : > { %v1521_v1 = vpack.c.bf16 %v1517_v59, %v1517_v59 }
 0x47a   : > { %v1243_v33 = vpop.trf.xlu1 }
 0x47b   : > { %1259 = vxpose.xlu0.b32.start.end [1/1] (short) (narrow) %v1243_v33, 8  ;;  %v3369_v33 = vld [vmem:[#allocation11] ss:$0 sm:$0xff] }
 0x482   : > { %v1244_v34 = vpop.trf.xlu1 }
 0x48a   : > { %v1245_v35 = vpop.trf.xlu1 }
 0x48b   : > { %v3295_v36 = vpack.i.bf16 %v1245_v35, %v1244_v34 }
 0x48d   : > { %3296 = vxpose.xlu0.b32.start.end [1/1] (short) (narrow) %v3295_v36, 8 }
 0x492   : > { %v1246_v37 = vpop.trf.xlu1 }
 0x493   : > { %1355 = vxpose.xlu2.b32.start.end [1/1] (short) (narrow) %v1246_v37, 8 }
 0x51f   : > { %v1275_v41 = vpop.trf.xlu0 }
 0x520   : > { %v1387_v43 = vpack.c.bf16 %v1275_v41, %v1275_v41 }
 0x522   : > { %v1528_v45 = vsel %vm1526_vm3, %v1387_v43, 0  ;;  %v3395_v43 = vpop.eup %3394 }
 0x523   : > { %1537 = vmatpush.bf16.msrb.mxu3 %v1528_v45  ;;  %v1701_v44 = vmul.f32 32.0, %v3395_v43  ;;  %vm1705_vm4 = vweird.f32 %v3395_v43 }
 0x525   : > { %v1702_v45 = vsub.f32 1.0, %v1701_v44 }
 0x526   : > { %3045 = vmatmul.msk.bf16.vlgmr.msrb.gmra.mxu3 %vm1391_vm1, %v1519_v46 }
 0x527   : > { %1621 = vmatpush.bf16.msra.mxu3 %v1612_v3  ;;  %v1703_v46 = vmul.f32 %v3395_v43, %v1702_v45 }
 0x529   : > { %v1704_v47 = vadd.f32 %v3395_v43, %v1703_v46 }
 0x52b   : > { %1765 = vmatpush.bf16.msrb.mxu3 %v3131_v53 }
 0x52c   : > { %v1371_v48 = vpop.trf.xlu2 }
 0x52d   : > { %v1390_v50 = vpack.c.bf16 %v1371_v48, %v1371_v48  ;;  %v4192_v48 = vsel %vm1705_vm4, %v3395_v43, %v1704_v47 }
 0x52f   : > { %v1585_v51 = vsel %vm1526_vm3, %v1390_v50, 0 }
 0x530   : > { %1594 = vmatpush.bf16.msra.mxu2 %v1585_v51 }
 0x531   : > { %v3297_v55 = vpop.trf.xlu0 }
 0x532   : > { %v3301_v56 = vunpack.i.h.bf16 %v3297_v55  ;;  %v3298_v57 = vunpack.i.l.bf16 %v3297_v55  ;;  %v3130_v55 = vld [vmem:[#allocation13] sm:$0xff] }
 0x533   : > { %3048 = vmatmul.msk.bf16.vlgmr.msra.gmra.mxu2 %vm1391_vm1, %v1522_v54  ;;  %v3133_v54 = vld [vmem:[#allocation13 + $0x18] sm:$0xff]  ;;  %1766 = vmatpush.bf16.msrb.mxu3 %v3130_v55 }
 0x534   : > { %v1388_v60 = vpack.c.bf16 %v3298_v57, %v3298_v57  ;;  %v1389_v61 = vpack.c.bf16 %v3301_v56, %v3301_v56  ;;  %1678 = vmatpush.bf16.msrb.mxu2 %v1669_v6  ;;  %v3132_v56 = vld [vmem:[#allocation13 + $0x10] sm:$0xff] }
 0x535   : > { %v785_v57 = vld [vmem:[%s671_s1] sm:$0xff] }
 0x536   : > { %v1547_v62 = vsel %vm1526_vm3, %v1388_v60, 0  ;;  %v1566_v63 = vsel %vm1526_vm3, %v1389_v61, 0  ;;  %v1735_v58 = vpack.c.bf16 %v785_v57, %v785_v57 }
 0x537   : > { %1556 = vmatpush.bf16.msra.mxu0 %v1547_v62  ;;  %1575 = vmatpush.bf16.msra.mxu1 %v1566_v63 }
 0x53a   : > { %3046 = vmatmul.msk.bf16.vlgmr.msra.gmra.mxu0 %vm1391_vm1, %v1520_v0  ;;  %3047 = vmatmul.msk.bf16.vlgmr.msra.gmra.mxu1 %vm1391_vm1, %v1521_v1 }
 0x53b   : > { %1640 = vmatpush.bf16.msrb.mxu0 %v1631_v9  ;;  %1659 = vmatpush.bf16.msrb.mxu1 %v1650_v10 }
 0x53f   : > { %1803 = vmatpush.bf16.msra.mxu0 %v3133_v54 }
 0x543   : > { %1804 = vmatpush.bf16.msra.mxu0 %v3132_v56 }
 0x5a9   : > { %v1539_v11 = vpop.f32.mrf.mxu3 }
 0x5aa   : > { %v1600_v12 = vpack.c.bf16 %v1539_v11, %v1539_v11 }
 0x5ac   : > { %3049 = vmatmul.msk.bf16.vlgmr.msra.gmra.mxu3 %vm1391_vm1, %v1600_v12 }
 0x5b1   : > { %v1541_v13 = vpop.f32.mrf.mxu3 }
 0x5b6   : > { %v1596_v14 = vpop.f32.mrf.mxu2 }
 0x5b7   : > { %v1603_v15 = vpack.c.bf16 %v1596_v14, %v1596_v14  ;;  %v1558_v16 = vpop.f32.mrf.mxu0  ;;  %v1577_v17 = vpop.f32.mrf.mxu1  ;;  %v3372_v14 = vld [vmem:[%s4421_s17 + $0x1] ss:$0 sm:$0xff] }
 0x5b8   : > { %v1601_v18 = vpack.c.bf16 %v1558_v16, %v1558_v16  ;;  %v1602_v19 = vpack.c.bf16 %v1577_v17, %v1577_v17 }
 0x5b9   : > { %3052 = vmatmul.msk.bf16.vlgmr.msrb.gmra.mxu2 %vm1391_vm1, %v1603_v15  ;;  %v3373_v15 = vld [vmem:[%s4421_s17] ss:$0 sm:$0xff] }
 0x5ba   : > { %3050 = vmatmul.msk.bf16.vlgmr.msrb.gmra.mxu0 %vm1391_vm1, %v1601_v18  ;;  %3051 = vmatmul.msk.bf16.vlgmr.msrb.gmra.mxu1 %vm1391_vm1, %v1602_v19 }
 0x5be   : > { %v1598_v20 = vpop.f32.mrf.mxu2 }
 0x5bf   : > { %v1560_v21 = vpop.f32.mrf.mxu0  ;;  %v1579_v22 = vpop.f32.mrf.mxu1 }
 0x5ca   : > { %3071 = vmatmul.msk.bf16.vlgmr.msra.gmra.mxu0 %vm811_vm0, %v1735_v58 }
 0x62f   : > { %v1623_v23 = vpop.f32.mrf.mxu3 }
 0x630   : > { %v1684_v26 = vsel %vm811_vm0, %v1623_v23, 0.0 }
 0x637   : > { %v1625_v24 = vpop.f32.mrf.mxu3  ;;  %v1642_v25 = vpop.f32.mrf.mxu0 }
 0x638   : > { %v1685_v27 = vsel %vm811_vm0, %v1642_v25, 0.0  ;;  %v1661_v28 = vpop.f32.mrf.mxu1 }
 0x639   : > { %v1686_v29 = vadd.f32 %v1685_v27, %v1684_v26  ;;  %v1687_v30 = vsel %vm811_vm0, %v1661_v28, 0.0 }
 0x63b   : > { %v1688_v31 = vadd.f32 %v1687_v30, %v1686_v29 }
 0x63c   : > { %v1680_v32 = vpop.f32.mrf.mxu2 }
 0x63d   : > { %v1689_v34 = vsel %vm811_vm0, %v1680_v32, 0.0 }
 0x63e   : > { %v1690_v35 = vadd.f32 %v1689_v34, %v1688_v31 }
 0x63f   : > { %v1644_v36 = vpop.f32.mrf.mxu0 }
 0x640   : > { %v1695_v37 = vadd.f32 %v3369_v33, %v1690_v35  ;;  %v1663_v38 = vpop.f32.mrf.mxu1 }
 0x641   : > { %v3135_v38 = vld [vmem:[#allocation13 + $0x28] sm:$0xff] }
 0x642   : > { %v1696_v39 = vadd.f32 %v1695_v37, %v4126_v4  ;;  %1838 = vmatpush.bf16.msra.mxu1 %v3135_v38 }
 0x644   : > { %v1682_v40 = vpop.f32.mrf.mxu2  ;;  %v1697_v41 = vsel %vm811_vm0, %v1696_v39, 0.0 }
 0x645   : > { %1698 = vadd.xlane.f32.xlu1 %v1697_v41 }
 0x647   : > { %v1806_v12 = vpop.f32.mrf.mxu0 }
 0x648   : > { %v1807_v17 = vadd.f32 %v3372_v14, %v1806_v12 }
 0x64f   : > { %v1808_v13 = vpop.f32.mrf.mxu0 }
 0x6b8   : > { %v1699_v49 = vpop.xlane.xlu1 %1698 }
 0x6b9   : > { %v1707_v50 = vmul.f32 %v4192_v48, %v1699_v49 }
 0x6bb   : > { %v1708_v51 = vsub.f32 %v1696_v39, %v1707_v50  ;;  %v3134_v39 = vld [vmem:[#allocation13 + $0x20] sm:$0xff] }
 0x6bc   : > { %1839 = vmatpush.bf16.msra.mxu1 %v3134_v39 }
 0x6bd   : > { %v1709_v4 = vmul.f32 %v1708_v51, %v1708_v51 }
 0x6bf   : > { %v1710_v52 = vsel %vm811_vm0, %v1709_v4, 0.0  ;;  %3081 = vmatmul.msk.bf16.vlgmr.msra.gmra.mxu1 %vm811_vm0, %v1735_v58 }
 0x6c0   : > { %1711 = vadd.xlane.f32.xlu2 %v1710_v52 }
 0x733   : > { %v1712_v59 = vpop.xlane.xlu2 %1711 }
 0x734   : > { %v1713_v60 = vmul.f32 %v1712_v59, %v4192_v48 }
 0x736   : > { %v1714_v61 = vadd.f32 1e-05, %v1713_v60 }
 0x738   : > { %3396 = vrsqrt.f32 %v1714_v61  ;;  %vm1721_vm6 = vweird.f32 %v1714_v61 }
 0x73e   : > { %v3397_v62 = vpop.eup %3396 }
 0x73f   : > { %v1716_v63 = vmul.f32 %v3397_v62, %v1714_v61  ;;  %vm1722_vm5 = vweird.f32 %v3397_v62 }
 0x740   : > { %vm1723_vm7 = vmor %vm1721_vm6, %vm1722_vm5 }
 0x741   : > { %v1717_v0 = vmul.f32 %v3397_v62, %v1716_v63 }
 0x743   : > { %v1718_v1 = vmul.f32 0.5, %v1717_v0  ;;  %v1841_v0 = vpop.f32.mrf.mxu1 }
 0x745   : > { %v1719_v2 = vsub.f32 1.5, %v1718_v1 }
 0x747   : > { %v1720_v3 = vmul.f32 %v3397_v62, %v1719_v2  ;;  %v787_v2 = vld [vmem:[%s690_s18] sm:$0x1]  ;;  %s4425_s18 = sld [smem:[#allocation43_spill]] }
 0x748   : > { %vm2414_vm8 = vcmp.eq.f32.partialorder %v787_v2, 0.0 }
 0x749   : > { %v1724_v6 = vsel %vm1723_vm7, %v3397_v62, %v1720_v3  ;;  %v3784_v3 = vmov 0  }
 0x74a   : > { %v1725_v8 = vmul.f32 %v1724_v6, %v1708_v51  ;;  %v2415_v6 = vsel %vm2414_vm8, 1, %v3784_v3 }
 0x74b   : > { %v1843_v1 = vpop.f32.mrf.mxu1 }
 0x74c   : > { %v1729_v9 = vmul.f32 %v4203_v5, %v1725_v8  ;;  %v2416_v8 = vperm.slane %v2415_v6, 0 }
 0x74e   : > { %v4212_v10 = vadd.f32 %v4208_v7, %v1729_v9  ;;  %vm2417_vm9 = vcmp.eq.s32.totalorder %v2416_v8, 1 }
 0x750   : > { %v1734_v11 = vpack.c.bf16 %v4212_v10, %v4212_v10 }
 0x752   : > { %3061 = vmatmul.msk.bf16.vlgmr.msrb.gmra.mxu3 %vm811_vm0, %v1734_v11 }
 0x7d5   : > { %v1768_v16 = vpop.f32.mrf.mxu3 }
 0x7d6   : > { %v1769_v18 = vadd.f32 %v3373_v15, %v1768_v16 }
 0x7d8   : > { %v1845_v19 = vmul.f32 0.35355338, %v1769_v18 }
 0x7da   : > { %v3302_v20 = vpack.i.bf16 %v1845_v19, %v1807_v17 }
 0x7dc   : > { %3303 = vxpose.xlu0.b32.start.end [1/1] (short) (narrow) %v3302_v20, 32 }
 0x7dd   : > { %v1770_v21 = vpop.f32.mrf.mxu3 }
 0x880   : > { %v3304_v22 = vpop.trf.xlu0 }
 0x881   : > { %v3305_v25 = vunpack.i.l.bf16 %v3304_v22  ;;  %v3308_v29 = vunpack.i.h.bf16 %v3304_v22 }
 0x888   : > { %v3309_v23 = vpop.trf.xlu0 }
 0x889   : > { %v3310_v24 = vunpack.i.l.bf16 %v3309_v23  ;;  %v3313_v27 = vunpack.i.h.bf16 %v3309_v23 }
 0x88b   : > { %v3324_v26 = vpack.i.bf16 %v3310_v24, %v3305_v25  ;;  %v3331_v30 = vpack.i.bf16 %v3313_v27, %v3308_v29 }
 0x88d   : > { %3325 = vxpose.xlu0.b32.start.end [1/1] (short) (narrow) %v3324_v26, 8 }
 0x890   : > { %v3314_v28 = vpop.trf.xlu0 }
 0x891   : > { %v3315_v31 = vunpack.i.l.bf16 %v3314_v28  ;;  %v3318_v36 = vunpack.i.h.bf16 %v3314_v28 }
 0x895   : > { %3332 = vxpose.xlu0.b32.start.end [1/1] (short) (narrow) %v3331_v30, 8 }
 0x898   : > { %v3319_v32 = vpop.trf.xlu0 }
 0x899   : > { %v3320_v33 = vunpack.i.l.bf16 %v3319_v32  ;;  %v3323_v35 = vunpack.i.h.bf16 %v3319_v32 }
 0x89b   : > { %v3338_v34 = vpack.i.bf16 %v3320_v33, %v3315_v31  ;;  %v3345_v37 = vpack.i.bf16 %v3323_v35, %v3318_v36 }
 0x89d   : > { %3339 = vxpose.xlu0.b32.start.end [1/1] (short) (narrow) %v3338_v34, 8 }
 0x8a5   : > { %3346 = vxpose.xlu0.b32.start.end [1/1] (short) (narrow) %v3345_v37, 8 }
 0x931   : > { %v3326_v40 = vpop.trf.xlu0 }
 0x932   : > { %v3330_v41 = vunpack.i.h.bf16 %v3326_v40  ;;  %v3327_v42 = vunpack.i.l.bf16 %v3326_v40 }
 0x934   : > { %v2170_v43 = vpack.c.bf16 %v3327_v42, %v3327_v42  ;;  %v2171_v44 = vpack.c.bf16 %v3330_v41, %v3330_v41 }
 0x936   : > { %v2342_v45 = vsel %vm1391_vm1, %v2170_v43, 0  ;;  %v2361_v46 = vsel %vm1391_vm1, %v2171_v44, 0 }
 0x937   : > { %2351 = vmatpush.bf16.xpose.msra.mxu2 %v2342_v45  ;;  %2370 = vmatpush.bf16.xpose.msra.mxu3 %v2361_v46  ;;  %v3374_v46 = vld [vmem:[%s4421_s17 + $0x2] ss:$0 sm:$0xff] }
 0x939   : > { %v3333_v47 = vpop.trf.xlu0 }
 0x93a   : > { %v3337_v49 = vunpack.i.h.bf16 %v3333_v47  ;;  %v3334_v50 = vunpack.i.l.bf16 %v3333_v47  ;;  %v1842_v47 = vadd.f32 %v3374_v46, %v1841_v0 }
 0x93c   : > { %v2007_v51 = vpack.c.bf16 %v3337_v49, %v3337_v49  ;;  %v2006_v4 = vpack.c.bf16 %v3334_v50, %v3334_v50 }
 0x93e   : > { %3082 = vmatmul.msk.bf16.vlgmr.msra.gmra.mxu2 %vm1391_vm1, %v2006_v4  ;;  %3083 = vmatmul.msk.bf16.vlgmr.msra.gmra.mxu3 %vm1391_vm1, %v2007_v51 }
 0x941   : > { %v3340_v52 = vpop.trf.xlu0 }
 0x942   : > { %v3344_v53 = vunpack.i.h.bf16 %v3340_v52  ;;  %v3341_v54 = vunpack.i.l.bf16 %v3340_v52 }
 0x944   : > { %v2172_v55 = vpack.c.bf16 %v3341_v54, %v3341_v54  ;;  %v2173_v56 = vpack.c.bf16 %v3344_v53, %v3344_v53 }
 0x946   : > { %v2380_v57 = vsel %vm1391_vm1, %v2172_v55, 0  ;;  %v2399_v58 = vsel %vm1391_vm1, %v2173_v56, 0 }
 0x947   : > { %2389 = vmatpush.bf16.xpose.msrb.mxu0 %v2380_v57  ;;  %2408 = vmatpush.bf16.xpose.msrb.mxu1 %v2399_v58 }
 0x949   : > { %v3347_v59 = vpop.trf.xlu0 }
 0x94a   : > { %v3351_v60 = vunpack.i.h.bf16 %v3347_v59  ;;  %v3348_v61 = vunpack.i.l.bf16 %v3347_v59 }
 0x94c   : > { %v2009_v62 = vpack.c.bf16 %v3351_v60, %v3351_v60  ;;  %v2008_v63 = vpack.c.bf16 %v3348_v61, %v3348_v61 }
 0x94e   : > { %3084 = vmatmul.msk.bf16.vlgmr.msrb.gmra.mxu0 %vm1391_vm1, %v2008_v63  ;;  %3085 = vmatmul.msk.bf16.vlgmr.msrb.gmra.mxu1 %vm1391_vm1, %v2009_v62 }
 0x9c1   : > { %v2353_v9 = vpop.f32.mrf.mxu2  ;;  %v2372_v11 = vpop.f32.mrf.mxu3 }
 0x9c2   : > { %v2418_v12 = vsel %vm2417_vm9, -1e+10, %v2353_v9  ;;  %v2419_v13 = vsel %vm2417_vm9, -1e+10, %v2372_v11 }
 0x9c3   : > { %v2425_v14 = vsel %vm1391_vm1, %v2419_v13, -inf  ;;  %v2422_v15 = vsel %vm1391_vm1, %v2418_v12, -inf }
 0x9c4   : > { %2426 = vmax.xlane.f32.xlu2 %v2425_v14  ;;  %2423 = vmax.xlane.f32.xlu0 %v2422_v15 }
 0x9c9   : > { %v2355_v16 = vpop.f32.mrf.mxu2  ;;  %v2374_v17 = vpop.f32.mrf.mxu3 }
 0x9cb   : > { %v2391_v18 = vpop.f32.mrf.mxu0  ;;  %v2410_v19 = vpop.f32.mrf.mxu1 }
 0x9cc   : > { %v2420_v20 = vsel %vm2417_vm9, -1e+10, %v2391_v18  ;;  %v2421_v21 = vsel %vm2417_vm9, -1e+10, %v2410_v19 }
 0x9cd   : > { %v2428_v22 = vsel %vm1391_vm1, %v2420_v20, -inf  ;;  %v2431_v23 = vsel %vm1391_vm1, %v2421_v21, -inf }
 0x9ce   : > { %2429 = vmax.xlane.f32.xlu1 %v2428_v22  ;;  %2432 = vmax.xlane.f32.xlu2 %v2431_v23 }
 0x9d3   : > { %v2393_v24 = vpop.f32.mrf.mxu0  ;;  %v2412_v25 = vpop.f32.mrf.mxu1 }
 0x9d4   : > { %v2550_v24 = vld [vmem:[#allocation14] sm:$0xf]  ;;  %v2551_v25 = vld [vmem:[#allocation14 + $0x4] sm:$0xf] }
 0xa37   : > { %v2427_v26 = vpop.xlane.xlu2 %2426  ;;  %v2424_v27 = vpop.xlane.xlu0 %2423 }
 0xa38   : > { %v2435_v28 = vsub.f32 %v2419_v13, %v2427_v26  ;;  %v2434_v29 = vsub.f32 %v2418_v12, %v2424_v27  ;;  %v2558_v26 = vsel %vm1526_vm3, %v2550_v24, 0  ;;  %v2577_v27 = vsel %vm1526_vm3, %v2551_v25, 0  ;;  %v3139_v25 = vld [vmem:[%s4423_s24 + $0x8] sm:$0xff] }
 0xa3a   : > { %v2440_v30 = vmul.f32 1.442695, %v2435_v28  ;;  %v2438_v31 = vmul.f32 1.442695, %v2434_v29  ;;  %v2552_v28 = vld [vmem:[#allocation14 + $0x8] sm:$0xf] }
 0xa3b   : > { %v2553_v29 = vld [vmem:[#allocation14 + $0xc] sm:$0xf] }
 0xa3c   : > { %3398 = vpow2.f32 %v2440_v30  ;;  %v2596_v30 = vsel %vm1526_vm3, %v2552_v28, 0 }
 0xa3d   : > { %3400 = vpow2.f32 %v2438_v31  ;;  %v2615_v31 = vsel %vm1526_vm3, %v2553_v29, 0 }
 0xa41   : > { %v2430_v32 = vpop.xlane.xlu1 %2429  ;;  %v2433_v33 = vpop.xlane.xlu2 %2432 }
 0xa42   : > { %v3399_v34 = vpop.eup %3398  ;;  %v2436_v35 = vsub.f32 %v2420_v20, %v2430_v32  ;;  %v2437_v39 = vsub.f32 %v2421_v21, %v2433_v33 }
 0xa43   : > { %v3401_v36 = vpop.eup %3400  ;;  %v2449_v37 = vsel %vm1391_vm1, %v3399_v34, 0.0 }
 0xa44   : > { %v2442_v38 = vmul.f32 1.442695, %v2436_v35  ;;  %2450 = vadd.xlane.f32.xlu2 %v2449_v37  ;;  %v2446_v40 = vsel %vm1391_vm1, %v3401_v36, 0.0  ;;  %v2444_v41 = vmul.f32 1.442695, %v2437_v39 }
 0xa45   : > { %2447 = vadd.xlane.f32.xlu1 %v2446_v40 }
 0xa46   : > { %3402 = vpow2.f32 %v2442_v38 }
 0xa47   : > { %3404 = vpow2.f32 %v2444_v41 }
 0xa4c   : > { %v3403_v42 = vpop.eup %3402 }
 0xa4d   : > { %v2452_v43 = vsel %vm1391_vm1, %v3403_v42, 0.0  ;;  %v3405_v44 = vpop.eup %3404 }
 0xa4e   : > { %2453 = vadd.xlane.f32.xlu2 %v2452_v43  ;;  %v2455_v45 = vsel %vm1391_vm1, %v3405_v44, 0.0 }
 0xa56   : > { %2456 = vadd.xlane.f32.xlu2 %v2455_v45 }
 0xa7f   : > { %2174 = vxpose.xlu1.b32.start.end [1/1] (short) (narrow) %v1842_v47, 32 }
 0xab7   : > { %v2451_v55 = vpop.xlane.xlu2 %2450 }
 0xab8   : > { %v2448_v49 = vpop.xlane.xlu1 %2447  ;;  %3406 = vrcp.f32 %v2451_v55  ;;  %v3375_v55 = vld [vmem:[%s4422_s12] ss:$0 sm:$0xff]  ;;  %s4426_s12 = sld [smem:[#allocation45_spill]] }
 0xab9   : > { %3408 = vrcp.f32 %v2448_v49 }
 0xabe   : > { %v3407_v58 = vpop.eup %3406  ;;  %s2796_s7 = scalar_lea.hbm %s4426_s12, %s3121_s26  ;;  %s3708_s29 = scalar_lea.hbm %s4426_s12, 16 }
 0xabf   : > { %v3409_v59 = vpop.eup %3408  ;;  %v2463_v63 = vmul.f32 %v3407_v58, %v3399_v34  ;;  %s2800_s22 = sshll.u32 %s2796_s7, 4  ;;  %s2801_s22 = int_to_ptr.hbm [resolvable:$true] %s2800_s22 }
 0xac0   : > { %v2462_v0 = vmul.f32 %v3409_v59, %v3401_v36  ;;  %s3702_s19 = sshra.s32 %s2801_s22, 4  ;;  %s3703_s19 = int_to_ptr.hbm [resolvable:$true] %s3702_s19 }
 0xac1   : > { %v2454_v56 = vpop.xlane.xlu2 %2453  ;;  %v2467_v8 = vpack.c.bf16 %v2463_v63, %v2463_v63  ;;  %s3704_s1 = scalar_lea.hbm %s3703_s19, 8  ;;  %p3709_p10 = scmp.lt.s32.totalorder %s3703_s19, %s4426_s12 }
 0xac2   : > { %v2466_v9 = vpack.c.bf16 %v2462_v0, %v2462_v0  ;;  %3410 = vrcp.f32 %v2454_v56  ;;  %p3705_p13 = scmp.ne.s32.totalorder %s3703_s19, %s3704_s1  ;;  %p3710_p6 = scmp.lt.s32.totalorder %s3708_s29, %s3704_s1 }
 0xac4   : > { %p3706_p1 = pnand %p3705_p13, %p3962_p0  ;;  %p3711_p11 = por %p3710_p6, %p3709_p10 }
 0xac6   : > { %p3707_p7 = pneg %p3706_p1 }
 0xac8   : > { %v3411_v11 = vpop.eup %3410  ;;  %p3712_p3 = pnand %p3711_p11, %p3707_p7 }
 0xac9   : > { %v2457_v57 = vpop.xlane.xlu2 %2456  ;;  %v2464_v16 = vmul.f32 %v3411_v11, %v3403_v42 }
 0xaca   : > { %3412 = vrcp.f32 %v2457_v57 }
 0xacb   : > { %v2468_v22 = vpack.c.bf16 %v2464_v16, %v2464_v16 }
 0xad0   : > { %v3413_v12 = vpop.eup %3412 }
 0xad1   : > { %v2465_v17 = vmul.f32 %v3413_v12, %v3405_v44  ;;  %v3140_v12 = vld [vmem:[%s4423_s24 + $0x10] sm:$0xff] }
 0xad3   : > { %v2469_v23 = vpack.c.bf16 %v2465_v17, %v2465_v17 }
 0xb23   : > { %v2190_v50 = vpop.trf.xlu1 }
 0xb2b   : > { %v2191_v51 = vpop.trf.xlu1 }
 0xb2c   : > { %v3352_v4 = vpack.i.bf16 %v2191_v51, %v2190_v50 }
 0xb2e   : > { %3353 = vxpose.xlu2.b32.start.end [1/1] (short) (narrow) %v3352_v4, 8 }
 0xb33   : > { %v2192_v52 = vpop.trf.xlu1 }
 0xb3b   : > { %v2193_v53 = vpop.trf.xlu1 }
 0xb3c   : > { %v3359_v54 = vpack.i.bf16 %v2193_v53, %v2192_v52 }
 0xb3e   : > { %3360 = vxpose.xlu0.b32.start.end [1/1] (short) (narrow) %v3359_v54, 8 }
 0xbc7   : > { %v3354_v60 = vpop.trf.xlu2 }
 0xbc8   : > { %v3358_v61 = vunpack.i.h.bf16 %v3354_v60  ;;  %v3355_v62 = vunpack.i.l.bf16 %v3354_v60 }
 0xbca   : > { %v2334_v1 = vpack.c.bf16 %v3355_v62, %v3355_v62  ;;  %v2335_v2 = vpack.c.bf16 %v3358_v61, %v3358_v61 }
 0xbcc   : > { %v2474_v3 = vsel %vm1526_vm3, %v2334_v1, 0  ;;  %v2493_v6 = vsel %vm1526_vm3, %v2335_v2, 0 }
 0xbcd   : > { %2483 = vmatpush.bf16.msrb.mxu2 %v2474_v3  ;;  %2502 = vmatpush.bf16.msrb.mxu3 %v2493_v6  ;;  %v3137_v6 = vld [vmem:[#allocation16 + $0x8] sm:$0xff] }
 0xbd0   : > { %3086 = vmatmul.msk.bf16.vlgmr.msrb.gmra.mxu2 %vm1391_vm1, %v2466_v9  ;;  %3087 = vmatmul.msk.bf16.vlgmr.msrb.gmra.mxu3 %vm1391_vm1, %v2467_v8  ;;  %v3136_v8 = vld [vmem:[#allocation16] sm:$0xff]  ;;  %v3141_v9 = vld [vmem:[%s4423_s24 + $0x18] sm:$0xff] }
 0xbd1   : > { %2567 = vmatpush.bf16.msra.mxu2 %v2558_v26  ;;  %2586 = vmatpush.bf16.msra.mxu3 %v2577_v27  ;;  %v3138_v26 = vld [vmem:[%s4423_s24] sm:$0xff] }
 0xbd2   : > { %v3376_v27 = vld [vmem:[%s4424_s13] ss:$0 sm:$0xff] }
 0xbd5   : > { %2697 = vmatpush.bf16.msrb.mxu2 %v3137_v6  ;;  %2750 = vmatpush.bf16.msrb.mxu3 %v3141_v9 }
 0xbd9   : > { %2698 = vmatpush.bf16.msrb.mxu2 %v3136_v8  ;;  %2751 = vmatpush.bf16.msrb.mxu3 %v3140_v12 }
 0xbdd   : > { %2752 = vmatpush.bf16.msrb.mxu3 %v3139_v25 }
 0xbe1   : > { %2753 = vmatpush.bf16.msrb.mxu3 %v3138_v26 }
 0xbe2   : > { %v3361_v13 = vpop.trf.xlu0 }
 0xbe3   : > { %v3365_v14 = vunpack.i.h.bf16 %v3361_v13  ;;  %v3362_v15 = vunpack.i.l.bf16 %v3361_v13 }
 0xbe5   : > { %v2336_v18 = vpack.c.bf16 %v3362_v15, %v3362_v15  ;;  %v2337_v19 = vpack.c.bf16 %v3365_v14, %v3365_v14 }
 0xbe7   : > { %v2512_v20 = vsel %vm1526_vm3, %v2336_v18, 0  ;;  %v2531_v21 = vsel %vm1526_vm3, %v2337_v19, 0 }
 0xbe8   : > { %2521 = vmatpush.bf16.msra.mxu0 %v2512_v20  ;;  %2540 = vmatpush.bf16.msra.mxu1 %v2531_v21 }
 0xbeb   : > { %3088 = vmatmul.msk.bf16.vlgmr.msra.gmra.mxu0 %vm1391_vm1, %v2468_v22  ;;  %3089 = vmatmul.msk.bf16.vlgmr.msra.gmra.mxu1 %vm1391_vm1, %v2469_v23 }
 0xbec   : > { %2605 = vmatpush.bf16.msrb.mxu0 %v2596_v30  ;;  %2624 = vmatpush.bf16.msrb.mxu1 %v2615_v31 }
 0xc53   : > { %v2485_v32 = vpop.f32.mrf.mxu2  ;;  %v2504_v33 = vpop.f32.mrf.mxu3 }
 0xc54   : > { %v2546_v34 = vpack.c.bf16 %v2485_v32, %v2485_v32  ;;  %v2547_v35 = vpack.c.bf16 %v2504_v33, %v2504_v33  ;;  %v3377_v33 = vld [vmem:[%s4425_s18] ss:$0 sm:$0xff] }
 0xc56   : > { %3090 = vmatmul.msk.bf16.vlgmr.msra.gmra.mxu2 %vm1391_vm1, %v2546_v34  ;;  %3091 = vmatmul.msk.bf16.vlgmr.msra.gmra.mxu3 %vm1391_vm1, %v2547_v35 }
 0xc5b   : > { %v2487_v36 = vpop.f32.mrf.mxu2  ;;  %v2506_v37 = vpop.f32.mrf.mxu3 }
 0xc68   : > { %v2523_v38 = vpop.f32.mrf.mxu0  ;;  %v2542_v39 = vpop.f32.mrf.mxu1 }
 0xc69   : > { %v2548_v40 = vpack.c.bf16 %v2523_v38, %v2523_v38  ;;  %v2549_v41 = vpack.c.bf16 %v2542_v39, %v2542_v39 }
 0xc6b   : > { %3092 = vmatmul.msk.bf16.vlgmr.msrb.gmra.mxu0 %vm1391_vm1, %v2548_v40  ;;  %3093 = vmatmul.msk.bf16.vlgmr.msrb.gmra.mxu1 %vm1391_vm1, %v2549_v41 }
 0xc70   : > { %v2525_v42 = vpop.f32.mrf.mxu0  ;;  %v2544_v43 = vpop.f32.mrf.mxu1 }
 0xcd9   : > { %v2569_v44 = vpop.f32.mrf.mxu2  ;;  %v2588_v45 = vpop.f32.mrf.mxu3 }
 0xcda   : > { %v2630_v49 = vsel %vm811_vm0, %v2569_v44, 0.0  ;;  %v2631_v50 = vsel %vm811_vm0, %v2588_v45, 0.0 }
 0xcdb   : > { %v2632_v51 = vadd.f32 %v2631_v50, %v2630_v49 }
 0xce1   : > { %v2571_v46 = vpop.f32.mrf.mxu2  ;;  %v2590_v47 = vpop.f32.mrf.mxu3 }
 0xce8   : > { %v2607_v4 = vpop.f32.mrf.mxu0  ;;  %v2626_v52 = vpop.f32.mrf.mxu1 }
 0xce9   : > { %v2633_v53 = vsel %vm811_vm0, %v2607_v4, 0.0  ;;  %v2635_v56 = vsel %vm811_vm0, %v2626_v52, 0.0 }
 0xcea   : > { %v2634_v54 = vadd.f32 %v2633_v53, %v2632_v51 }
 0xcec   : > { %v2636_v57 = vadd.f32 %v2635_v56, %v2634_v54 }
 0xcee   : > { %v2641_v58 = vadd.f32 %v3375_v55, %v2636_v57 }
 0xcf0   : > { %v2609_v59 = vpop.f32.mrf.mxu0  ;;  %v2628_v60 = vpop.f32.mrf.mxu1  ;;  %v2642_v61 = vadd.f32 %v2641_v58, %v4212_v10 }
 0xcf2   : > { %v2643_v62 = vsel %vm811_vm0, %v2642_v61, 0.0 }
 0xcf3   : > { %2644 = vadd.xlane.f32.xlu1 %v2643_v62 }
 0xd66   : > { %v2645_v63 = vpop.xlane.xlu1 %2644 }
 0xd67   : > { %v2646_v0 = vmul.f32 %v2645_v63, %v4192_v48 }
 0xd69   : > { %v2647_v1 = vsub.f32 %v2642_v61, %v2646_v0 }
 0xd6b   : > { %v2648_v2 = vmul.f32 %v2647_v1, %v2647_v1 }
 0xd6d   : > { %v2649_v3 = vsel %vm811_vm0, %v2648_v2, 0.0 }
 0xd6e   : > { %2650 = vadd.xlane.f32.xlu2 %v2649_v3 }
 0xde1   : > { %v2651_v10 = vpop.xlane.xlu2 %2650 }
 0xde2   : > { %v2652_v11 = vmul.f32 %v2651_v10, %v4192_v48 }
 0xde4   : > { %v2653_v13 = vadd.f32 1e-05, %v2652_v11 }
 0xde6   : > { %3414 = vrsqrt.f32 %v2653_v13  ;;  %vm2660_vm11 = vweird.f32 %v2653_v13 }
 0xdec   : > { %v3415_v14 = vpop.eup %3414 }
 0xded   : > { %v2655_v15 = vmul.f32 %v3415_v14, %v2653_v13  ;;  %vm2661_vm10 = vweird.f32 %v3415_v14 }
 0xdee   : > { %vm2662_vm12 = vmor %vm2660_vm11, %vm2661_vm10 }
 0xdef   : > { %v2656_v16 = vmul.f32 %v3415_v14, %v2655_v15 }
 0xdf1   : > { %v2657_v17 = vmul.f32 0.5, %v2656_v16 }
 0xdf3   : > { %v2658_v18 = vsub.f32 1.5, %v2657_v17 }
 0xdf5   : > { %v2659_v19 = vmul.f32 %v3415_v14, %v2658_v18 }
 0xdf7   : > { %v2663_v20 = vsel %vm2662_vm12, %v3415_v14, %v2659_v19 }
 0xdf8   : > { %v2664_v21 = vmul.f32 %v2663_v20, %v2647_v1 }
 0xdfa   : > { %v2665_v22 = vmul.f32 %v4203_v5, %v2664_v21 }
 0xdfc   : > { %v2666_v23 = vadd.f32 %v4208_v7, %v2665_v22 }
 0xdfe   : > { %v2667_v24 = vpack.c.bf16 %v2666_v23, %v2666_v23 }
 0xe00   : > { %3102 = vmatmul.msk.bf16.vlgmr.msrb.gmra.mxu2 %vm811_vm0, %v2667_v24 }
 0xe83   : > { %v2700_v28 = vpop.f32.mrf.mxu2 }
 0xe84   : > { %v2701_v29 = vadd.f32 %v3376_v27, %v2700_v28 }
 0xe86   : > { %v2704_v30 = vmax.f32 %v2701_v29, 0.0 }
 0xe88   : > { %v2705_v31 = vpack.c.bf16 %v2704_v30, %v2704_v30 }
 0xe8a   : > { %3119 = vmatmul.msk.bf16.vlgmr.msrb.gmra.mxu3 %vm2742_vm13, %v2705_v31 }
 0xe8b   : > { %v2702_v32 = vpop.f32.mrf.mxu2 }
 0xf0d   : > { %v2755_v34 = vpop.f32.mrf.mxu3 }
 0xf0e   : > { %v2756_v35 = vadd.f32 %v3377_v33, %v2755_v34 }
 0xf10   : > { %v2759_v36 = vadd.f32 %v2756_v35, %v2666_v23 }
 0xf12   : > { %v2760_v37 = vsel %vm811_vm0, %v2759_v36, 0.0 }
 0xf13   : > { %2761 = vadd.xlane.f32.xlu0 %v2760_v37 }
 0xf15   : > { %v2757_v38 = vpop.f32.mrf.mxu3 }
 0xf86   : > { %v2762_v39 = vpop.xlane.xlu0 %2761 }
 0xf87   : > { %v2763_v40 = vmul.f32 %v2762_v39, %v4192_v48 }
 0xf89   : > { %v2764_v41 = vsub.f32 %v2759_v36, %v2763_v40 }
 0xf8b   : > { %v2765_v42 = vmul.f32 %v2764_v41, %v2764_v41 }
 0xf8d   : > { %v2766_v43 = vsel %vm811_vm0, %v2765_v42, 0.0 }
 0xf8e   : > { %2767 = vadd.xlane.f32.xlu2 %v2766_v43 }
0x1001   : > { %v2768_v44 = vpop.xlane.xlu2 %2767 }
0x1002   : > { %v2769_v45 = vmul.f32 %v2768_v44, %v4192_v48 }
0x1004   : > { %v2770_v46 = vadd.f32 1e-05, %v2769_v45 }
0x1006   : > { %3416 = vrsqrt.f32 %v2770_v46  ;;  %vm2777_vm15 = vweird.f32 %v2770_v46 }
0x100c   : > { %v3417_v47 = vpop.eup %3416 }
0x100d   : > { %v2772_v49 = vmul.f32 %v3417_v47, %v2770_v46  ;;  %vm2778_vm14 = vweird.f32 %v3417_v47 }
0x100e   : > { %vm2779_vm1 = vmor %vm2777_vm15, %vm2778_vm14 }
0x100f   : > { %v2773_v50 = vmul.f32 %v3417_v47, %v2772_v49 }
0x1011   : > { %v2774_v51 = vmul.f32 0.5, %v2773_v50 }
0x1013   : > { %v2775_v4 = vsub.f32 1.5, %v2774_v51 }
0x1015   : > { %v2776_v52 = vmul.f32 %v3417_v47, %v2775_v4 }
0x1017   : > { %v2780_v48 = vsel %vm2779_vm1, %v3417_v47, %v2776_v52 }
0x1018   : > { %v2781_v53 = vmul.f32 %v2780_v48, %v2764_v41 }
0x101a   : > { %v2782_v54 = vmul.f32 %v4203_v5, %v2781_v53 }
0x101c   : > { %v2783_v55 = vadd.f32 %v4208_v7, %v2782_v54 }
0x101e   : > { %2784 = vst.msk [vmem:[%s782_s2] sm:$0xff] %vm811_vm0, %v2783_v55 }
0x101f   : > { %3715 = shalt.err (!%p3712_p3)
}
0x1020   : > { %3170 = dma.vmem_to_hbm [thread:$0]  (%p3962_p0), %s2799_s23, 128, %s2801_s22, %s2786_s20  }
0x1021 PF: > { %s4428_s27 = sld [smem:[#allocation25_spill]]  ;;  %p4430_p8 = scmp.ge.s32.totalorder %s3774_s30, 2 }
0x1023   : > { %p3202_p9 = pnand %p4430_p8, %p3970_p5 }
0x1025   : > { %p3203_p12 = pneg %p3202_p9 }
0x1027   : > { %s2812_s25 = sand.u32 1, %s4428_s27  }
0x1028   : > { %s2813_s18 = scalar_lea.sflag [#allocation4], %s2812_s25 }
0x1029   : > { %3757 = dma.done.wait (%p3203_p12), %s2813_s18, 128  }
0x102a   : > { %3759 = vsyncadd (%p3203_p12), %s2813_s18, 4294967168  ;;  %s4431_s30 = sld [smem:[#allocation27_spill]]  ;;  %s4434_s27 = smov %s3766_s28 }
0x102b   : > { %s4432_s26 = sld [smem:[#allocation26_spill]] }
0x102c   : > { %s4433_s29 = sld [smem:[#allocation28_spill]] }
0x1030   : > { %p39_p2 = scmp.ge.s32.totalorder %s4431_s30, 4  }
0x1031   : > { %s4435_s28 = smov %s4432_s26 }
0x1032   :  { %41 = sbr.rel (!%p39_p2) target bundleno = 27 (0x1b), region = 202 }
0x1037   :  { %2819 = vsyncpa [#allocation3], 1 }
0x1038   :  { %2821 = vsyncpa [#allocation3 + $0x1], 1 }
0x1039   :  { %2822 = vsyncpa [#allocation6], 1 }
0x103a   :  { %2824 = vsyncpa [#allocation6 + $0x1], 1 }
0x103b   :  { %2825 = vsyncpa [#allocation9], 1 }
0x103c   :  { %2827 = vsyncpa [#allocation9 + $0x1], 1 }
0x103d   :  { %2828 = vsyncpa [#allocation12], 1 }
0x103e   :  { %2829 = vsyncpa [#allocation15], 1 }
0x103f   :  { %2830 = vsyncpa [#allocation4], 1 }
0x1040   :  { %2832 = vsyncpa [#allocation4 + $0x1], 1 }

</bundles_post_ra>
